<compile_context>
chip_gen: v7x
topology: tpu7x:2x2x1
jax: 0.10.0
libtpu: 0.0.40
codegen_flags: <defaults>
</compile_context>

<pallas_src>
import jax
import jax.numpy as jnp
import numpy as np
from jax.experimental import pallas as pl
from jax.experimental.pallas import tpu as pltpu

# ---------------------------------------------------------------------------
# Problem sizes (small, consistent with the PyTorch module's forward)
# ---------------------------------------------------------------------------
N_NODES = 32          # number of mesh nodes
N_EDGES = 64          # number of directed edges
IN_DIM_NODE = 6       # dynamic vars + node_type + node_position
IN_DIM_EDGE = 3       # relative position + norm
HIDDEN = 32           # hidden_dim
OUT_DIM = 2           # output_dim (velocity changes)
OUT_PAD = 128         # lane-dense padded decoder output width
NUM_LAYERS = 2        # args.num_layers
LN_EPS = 1e-5         # PyTorch LayerNorm default eps
ENC_IN_PAD = 16       # padded width of the fused encoder input (>= 6+3+2)
BATCH = 4             # graphs / timesteps per kernel call in the demo

# ----- vector slab row layout (shared by packer and kernel) -----------------
NE_B2, NE_G, NE_BE = 0, 1, 2
EE_B2, EE_G, EE_BE = 3, 4, 5
DC_B1 = 6
VEC_LAYER_BASE = 7            # + 8*layer: pe_b1,pe_b2,pe_g,pe_be,pn_b1,pn_b2,pn_g,pn_be

# ----- [H,H] weight slab block layout ----------------------------------------
W_NE2, W_EE2, W_DC1 = 0, 1, 2
W_LAYER_BASE = 3              # + 2*layer: [pe_w2, pn_w2]


# ---------------------------------------------------------------------------
# Pallas kernel: full MeshGraphNet forward for one graph (one grid step)
# ---------------------------------------------------------------------------
def _mgn_kernel(enc_ref, gstk_ref, scat_ref,
                we1_ref, whh_ref, wpe1_ref, wpn1_ref, wd2_ref, bd2_ref,
                vec_ref, out_ref):
    n_total = enc_ref.shape[1]            # N + E
    n_nodes = scat_ref.shape[1]           # N
    n_edges = scat_ref.shape[2]           # E
    hidden = whh_ref.shape[1]
    num_layers = wpe1_ref.shape[0] // (3 * hidden)

    def dotf(a, b):
        # f32 operands, f32 accumulation (exact gather/scatter; works both on
        # the MXU and under interpret/CPU execution).
        return jnp.dot(a, b, preferred_element_type=jnp.float32)

    def layernorm(h, g, b):
        mu = jnp.mean(h, axis=-1, keepdims=True)
        var = jnp.mean((h - mu) ** 2, axis=-1, keepdims=True)
        return (h - mu) * jax.lax.rsqrt(var + LN_EPS) * g + b

    def vrow(i):                          # (1, H) bias / gamma / beta row
        return vec_ref[i:i + 1, :]

    def whh_blk(b):                       # (H, H) weight block
        return whh_ref[b * hidden:(b + 1) * hidden, :]

    # -------- fused encoders (normalization + layer-1 bias folded in) --------
    h1 = jnp.maximum(dotf(enc_ref[0], we1_ref[...]), 0.0)        # [N+E, H]
    x = dotf(h1[0:n_nodes, :], whh_blk(W_NE2)) + vrow(NE_B2)
    x = layernorm(x, vrow(NE_G), vrow(NE_BE))
    ea = dotf(h1[n_nodes:n_total, :], whh_blk(W_EE2)) + vrow(EE_B2)
    ea = layernorm(ea, vrow(EE_G), vrow(EE_BE))

    gstk = gstk_ref[0]        # [2E, N]: rows [0,E)=dst one-hot, [E,2E)=src
    scat = scat_ref[0]        # [N, E]:  scatter-sum by source node

    # -------- processor layers (statically unrolled) --------
    for l in range(num_layers):
        vb = VEC_LAYER_BASE + 8 * l
        eb = 3 * hidden * l
        nb = 2 * hidden * l

        # fused gather: [x[dst]; x[src]] in one [2E,N]@[N,H] matmul
        xij = dotf(gstk, x)
        x_i = xij[0:n_edges, :]
        x_j = xij[n_edges:2 * n_edges, :]

        # edge MLP: sum of three K=H dots (no lane concatenation)
        h = (dotf(x_i, wpe1_ref[eb:eb + hidden, :])
             + dotf(x_j, wpe1_ref[eb + hidden:eb + 2 * hidden, :])
             + dotf(ea, wpe1_ref[eb + 2 * hidden:eb + 3 * hidden, :])
             + vrow(vb + 0))
        h = jnp.maximum(h, 0.0)
        h = dotf(h, whh_blk(W_LAYER_BASE + 2 * l)) + vrow(vb + 1)
        updated_edges = layernorm(h, vrow(vb + 2), vrow(vb + 3)) + ea

        # aggregate: scatter-sum by edge_index[0]  ([N,E]@[E,H], exact one-hot)
        agg = dotf(scat, updated_edges)

        # node MLP: sum of two K=H dots (no lane concatenation)
        hn = (dotf(x, wpn1_ref[nb:nb + hidden, :])
              + dotf(agg, wpn1_ref[nb + hidden:nb + 2 * hidden, :])
              + vrow(vb + 4))
        hn = jnp.maximum(hn, 0.0)
        hn = dotf(hn, whh_blk(W_LAYER_BASE + 2 * l + 1)) + vrow(vb + 5)
        x = x + layernorm(hn, vrow(vb + 6), vrow(vb + 7))
        ea = updated_edges

    # -------- decoder (lane-dense padded store) --------
    hd = jnp.maximum(dotf(x, whh_blk(W_DC1)) + vrow(DC_B1), 0.0)
    out_ref[0] = dotf(hd, wd2_ref[...]) + bd2_ref[...]


# ---------------------------------------------------------------------------
# One-time parameter packing (hoist out of a per-timestep rollout loop)
# ---------------------------------------------------------------------------
def pack_mgn_params(p, mean_x, std_x, mean_e, std_e):
    f32 = jnp.float32
    H = p["ne_w2"].shape[0]
    L = p["pe_w1"].shape[0]
    din = p["ne_w1"].shape[0]
    dea = p["ee_w1"].shape[0]
    assert din + dea + 2 <= ENC_IN_PAD

    # fold input normalization into the encoder first layer (exact algebra)
    inv_sx = 1.0 / std_x.astype(f32)
    inv_se = 1.0 / std_e.astype(f32)
    w_nx = p["ne_w1"].astype(f32) * inv_sx[:, None]
    b_nx = p["ne_b1"].astype(f32) - (mean_x.astype(f32) * inv_sx) @ p["ne_w1"].astype(f32)
    w_ex = p["ee_w1"].astype(f32) * inv_se[:, None]
    b_ex = p["ee_b1"].astype(f32) - (mean_e.astype(f32) * inv_se) @ p["ee_w1"].astype(f32)

    # fused (node|edge) encoder first-layer weight, incl. bias-indicator rows
    w_enc1f = jnp.zeros((ENC_IN_PAD, H), f32)
    w_enc1f = w_enc1f.at[0:din, :].set(w_nx)
    w_enc1f = w_enc1f.at[din:din + dea, :].set(w_ex)
    w_enc1f = w_enc1f.at[din + dea, :].set(b_nx.reshape(H))
    w_enc1f = w_enc1f.at[din + dea + 1, :].set(b_ex.reshape(H))

    # all [H, H] weights in one slab (block layout matches W_* constants)
    hh_blocks = [p["ne_w2"], p["ee_w2"], p["dc_w1"]]
    for l in range(L):
        hh_blocks += [p["pe_w2"][l], p["pn_w2"][l]]
    w_hh = jnp.concatenate(hh_blocks, axis=0).astype(f32)

    w_pe1 = p["pe_w1"].reshape(L * 3 * H, H).astype(f32)     # [L*3H, H]
    w_pn1 = p["pn_w1"].reshape(L * 2 * H, H).astype(f32)     # [L*2H, H]

    # decoder second layer, padded to 128 lanes for an unmasked output store
    w_dec2 = jnp.zeros((H, OUT_PAD), f32).at[:, :OUT_DIM].set(p["dc_w2"])
    b_dec2 = jnp.zeros((1, OUT_PAD), f32).at[:, :OUT_DIM].set(p["dc_b2"])

    # every remaining bias / gamma / beta as one [*, H] slab
    vec_rows = [p["ne_b2"], p["ne_g"], p["ne_be"],
                p["ee_b2"], p["ee_g"], p["ee_be"],
                p["dc_b1"]]
    for l in range(L):
        vec_rows += [p["pe_b1"][l], p["pe_b2"][l], p["pe_g"][l], p["pe_be"][l],
                     p["pn_b1"][l], p["pn_b2"][l], p["pn_g"][l], p["pn_be"][l]]
    vecs = jnp.concatenate(vec_rows, axis=0).astype(f32)

    return (w_enc1f, w_hh, w_pe1, w_pn1, w_dec2, b_dec2, vecs)


# ---------------------------------------------------------------------------
# One-time per-mesh gather/scatter one-hots (hoist out of the rollout loop)
# ---------------------------------------------------------------------------
def build_gather_scatter(edge_index, n_nodes):
    """edge_index: [B, 2, E] int -> (gstk [B, 2E, N], scat [B, N, E]) f32."""
    src = edge_index[:, 0, :]
    dst = edge_index[:, 1, :]
    iota = jnp.arange(n_nodes, dtype=edge_index.dtype)
    g_dst = (dst[..., None] == iota).astype(jnp.float32)      # [B, E, N]
    g_src = (src[..., None] == iota).astype(jnp.float32)      # [B, E, N]
    gstk = jnp.concatenate([g_dst, g_src], axis=1)            # [B, 2E, N]
    scat = jnp.swapaxes(g_src, 1, 2)                          # [B, N, E]
    return gstk, scat


def _build_enc_input(x, edge_attr):
    """Block-diagonal fused encoder input [B, N+E, ENC_IN_PAD] (+bias indicators)."""
    B, n, din = x.shape
    _, e, dea = edge_attr.shape
    enc = jnp.zeros((B, n + e, ENC_IN_PAD), jnp.float32)
    enc = enc.at[:, :n, :din].set(x.astype(jnp.float32))
    enc = enc.at[:, :n, din + dea].set(1.0)                    # node bias col
    enc = enc.at[:, n:, din:din + dea].set(edge_attr.astype(jnp.float32))
    enc = enc.at[:, n:, din + dea + 1].set(1.0)                # edge bias col
    return enc


# ---------------------------------------------------------------------------
# Batched wrapper: one pallas_call over grid=(B,), weights VMEM-resident
# ---------------------------------------------------------------------------
def mesh_graph_net_forward_batched(packed, x, edge_attr, gstk, scat):
    B, n_nodes, _ = x.shape
    n_edges = edge_attr.shape[1]
    (w_enc1f, w_hh, w_pe1, w_pn1, w_dec2, b_dec2, vecs) = packed
    H = w_hh.shape[1]
    L = w_pe1.shape[0] // (3 * H)

    enc_in = _build_enc_input(x, edge_attr)                    # [B, N+E, P]

    per_graph = [enc_in, gstk, scat]
    weights = [w_enc1f, w_hh, w_pe1, w_pn1, w_dec2, b_dec2, vecs]

    def batch_spec(shape):
        nd = len(shape)
        return pl.BlockSpec((1,) + tuple(shape[1:]),
                            lambda b, _nd=nd: (b,) + (0,) * (_nd - 1))

    def resident_spec(shape):
        nd = len(shape)
        return pl.BlockSpec(tuple(shape),
                            lambda b, _nd=nd: (0,) * _nd)

    in_specs = ([batch_spec(a.shape) for a in per_graph]
                + [resident_spec(a.shape) for a in weights])
    out_spec = pl.BlockSpec((1, n_nodes, OUT_PAD), lambda b: (b, 0, 0))

    # cost estimate (total over the batch)
    flops_graph = 2 * (
        (n_nodes + n_edges) * ENC_IN_PAD * H          # fused encoder layer 1
        + (n_nodes + n_edges) * H * H                 # encoder layer 2
        + L * (2 * n_edges * n_nodes * H              # fused gather
               + n_edges * (3 * H * H + H * H)        # edge MLP
               + n_nodes * n_edges * H                # scatter-sum
               + n_nodes * (2 * H * H + H * H))       # node MLP
        + n_nodes * (H * H + H * OUT_PAD))            # decoder
    transc_graph = (n_nodes + n_edges) * (1 + L)      # one rsqrt per LN row
    per_graph_bytes = sum(int(np.prod(a.shape[1:])) * a.dtype.itemsize
                          for a in per_graph) + n_nodes * OUT_PAD * 4
    weight_bytes = sum(int(a.size) * a.dtype.itemsize for a in weights)
    bytes_accessed = B * per_graph_bytes + weight_bytes

    # VMEM budget: 2 pipeline buffers per blocked operand + resident weights
    vmem_limit = int(min(max(4 * per_graph_bytes + 2 * weight_bytes + (1 << 20),
                             2 << 20), 32 << 20))

    out_padded = pl.pallas_call(
        _mgn_kernel,
        out_shape=jax.ShapeDtypeStruct((B, n_nodes, OUT_PAD), jnp.float32),
        grid=(B,),
        in_specs=in_specs,
        out_specs=out_spec,
        compiler_params=pltpu.CompilerParams(
            dimension_semantics=("parallel",),        # megacore sharding on v7x
            vmem_limit_bytes=vmem_limit),
        cost_estimate=pl.CostEstimate(flops=int(B * flops_graph),
                                      transcendentals=int(B * transc_graph),
                                      bytes_accessed=int(bytes_accessed)),
    )(*per_graph, *weights)
    return out_padded[:, :, :OUT_DIM]


def mesh_graph_net_forward(params, x, edge_index, edge_attr,
                           mean_x, std_x, mean_e, std_e):
    """Single-graph convenience wrapper (same semantics as the PyTorch forward)."""
    packed = pack_mgn_params(params, mean_x, std_x, mean_e, std_e)
    gstk, scat = build_gather_scatter(edge_index[None].astype(jnp.int32), x.shape[0])
    out = mesh_graph_net_forward_batched(packed, x[None], edge_attr[None], gstk, scat)
    return out[0]


# ---------------------------------------------------------------------------
# Deterministic parameter initialization (PyTorch-style shapes)
# ---------------------------------------------------------------------------
def _linear_init(key, fan_in, fan_out):
    k1, k2 = jax.random.split(key)
    bound = 1.0 / np.sqrt(fan_in)
    w = jax.random.uniform(k1, (fan_in, fan_out), jnp.float32, -bound, bound)
    b = jax.random.uniform(k2, (1, fan_out), jnp.float32, -bound, bound)
    return w, b


def init_params(key):
    keys = jax.random.split(key, 8 + 4 * NUM_LAYERS)
    it = iter(keys)
    p = {}

    p["ne_w1"], p["ne_b1"] = _linear_init(next(it), IN_DIM_NODE, HIDDEN)
    p["ne_w2"], p["ne_b2"] = _linear_init(next(it), HIDDEN, HIDDEN)
    p["ne_g"] = jnp.ones((1, HIDDEN), jnp.float32)
    p["ne_be"] = jnp.zeros((1, HIDDEN), jnp.float32)

    p["ee_w1"], p["ee_b1"] = _linear_init(next(it), IN_DIM_EDGE, HIDDEN)
    p["ee_w2"], p["ee_b2"] = _linear_init(next(it), HIDDEN, HIDDEN)
    p["ee_g"] = jnp.ones((1, HIDDEN), jnp.float32)
    p["ee_be"] = jnp.zeros((1, HIDDEN), jnp.float32)

    pe_w1, pe_b1, pe_w2, pe_b2 = [], [], [], []
    pn_w1, pn_b1, pn_w2, pn_b2 = [], [], [], []
    for _ in range(NUM_LAYERS):
        w, b = _linear_init(next(it), 3 * HIDDEN, HIDDEN)
        pe_w1.append(w); pe_b1.append(b)
        w, b = _linear_init(next(it), HIDDEN, HIDDEN)
        pe_w2.append(w); pe_b2.append(b)
        w, b = _linear_init(next(it), 2 * HIDDEN, HIDDEN)
        pn_w1.append(w); pn_b1.append(b)
        w, b = _linear_init(next(it), HIDDEN, HIDDEN)
        pn_w2.append(w); pn_b2.append(b)
    p["pe_w1"] = jnp.stack(pe_w1); p["pe_b1"] = jnp.stack(pe_b1)
    p["pe_w2"] = jnp.stack(pe_w2); p["pe_b2"] = jnp.stack(pe_b2)
    p["pe_g"] = jnp.ones((NUM_LAYERS, 1, HIDDEN), jnp.float32)
    p["pe_be"] = jnp.zeros((NUM_LAYERS, 1, HIDDEN), jnp.float32)
    p["pn_w1"] = jnp.stack(pn_w1); p["pn_b1"] = jnp.stack(pn_b1)
    p["pn_w2"] = jnp.stack(pn_w2); p["pn_b2"] = jnp.stack(pn_b2)
    p["pn_g"] = jnp.ones((NUM_LAYERS, 1, HIDDEN), jnp.float32)
    p["pn_be"] = jnp.zeros((NUM_LAYERS, 1, HIDDEN), jnp.float32)

    p["dc_w1"], p["dc_b1"] = _linear_init(next(it), HIDDEN, HIDDEN)
    p["dc_w2"], p["dc_b2"] = _linear_init(next(it), HIDDEN, OUT_DIM)
    return p


# ---------------------------------------------------------------------------
# Pure-JAX f32 reference (mirrors the PyTorch forward exactly)
# ---------------------------------------------------------------------------
def reference_forward(p, x, edge_index, edge_attr, mean_x, std_x, mean_e, std_e):
    def mlp_ln(h, w1, b1, w2, b2, g, b):
        h = jax.nn.relu(h @ w1 + b1)
        h = h @ w2 + b2
        mu = h.mean(-1, keepdims=True)
        var = ((h - mu) ** 2).mean(-1, keepdims=True)
        return (h - mu) / jnp.sqrt(var + LN_EPS) * g + b

    src, dst = edge_index[0], edge_index[1]
    x = (x - mean_x) / std_x
    ea = (edge_attr - mean_e) / std_e
    x = mlp_ln(x, p["ne_w1"], p["ne_b1"], p["ne_w2"], p["ne_b2"],
               p["ne_g"], p["ne_be"])
    ea = mlp_ln(ea, p["ee_w1"], p["ee_b1"], p["ee_w2"], p["ee_b2"],
                p["ee_g"], p["ee_be"])
    for l in range(NUM_LAYERS):
        x_i = x[dst]                  # PyG: x_i = target nodes (edge_index[1])
        x_j = x[src]                  # PyG: x_j = source nodes (edge_index[0])
        ue = mlp_ln(jnp.concatenate([x_i, x_j, ea], axis=1),
                    p["pe_w1"][l], p["pe_b1"][l], p["pe_w2"][l], p["pe_b2"][l],
                    p["pe_g"][l], p["pe_be"][l]) + ea
        agg = jax.ops.segment_sum(ue, src, num_segments=x.shape[0])
        x = x + mlp_ln(jnp.concatenate([x, agg], axis=1),
                       p["pn_w1"][l], p["pn_b1"][l], p["pn_w2"][l], p["pn_b2"][l],
                       p["pn_g"][l], p["pn_be"][l])
        ea = ue
    h = jax.nn.relu(x @ p["dc_w1"] + p["dc_b1"])
    return h @ p["dc_w2"] + p["dc_b2"]


# ---------------------------------------------------------------------------
if __name__ == "__main__":
    key = jax.random.PRNGKey(0)
    k_par, k_x, k_e, k_idx, k_stats = jax.random.split(key, 5)

    params = init_params(k_par)

    B = BATCH
    x = jax.random.normal(k_x, (B, N_NODES, IN_DIM_NODE), jnp.float32)
    edge_attr = jax.random.normal(k_e, (B, N_EDGES, IN_DIM_EDGE), jnp.float32)
    edge_index = jax.random.randint(k_idx, (B, 2, N_EDGES), 0, N_NODES, jnp.int32)

    ks = jax.random.split(k_stats, 4)
    mean_x = 0.1 * jax.random.normal(ks[0], (IN_DIM_NODE,), jnp.float32)
    std_x = 0.5 + jax.random.uniform(ks[1], (IN_DIM_NODE,), jnp.float32)
    mean_e = 0.1 * jax.random.normal(ks[2], (IN_DIM_EDGE,), jnp.float32)
    std_e = 0.5 + jax.random.uniform(ks[3], (IN_DIM_EDGE,), jnp.float32)

    # pack weights / build per-mesh one-hots ONCE (hoisted out of the step loop)
    packed = pack_mgn_params(params, mean_x, std_x, mean_e, std_e)
    gstk, scat = build_gather_scatter(edge_index, N_NODES)

    fwd = jax.jit(mesh_graph_net_forward_batched)
    out = fwd(packed, x, edge_attr, gstk, scat)
    out = jax.block_until_ready(out)

    ref = jnp.stack([
        reference_forward(params, x[b], edge_index[b], edge_attr[b],
                          mean_x, std_x, mean_e, std_e)
        for b in range(B)])
    ref = jax.block_until_ready(ref)

    assert out.shape == (B, N_NODES, OUT_DIM)
    np.testing.assert_allclose(np.asarray(out), np.asarray(ref),
                               rtol=2e-3, atol=2e-3)
    print("KERNEL_OK")
</pallas_src>

<mosaic_0001>
module attributes {stable_mosaic.version = 11 : i64} {
  func.func @_mgn_kernel(%arg0: i32, %arg1: memref<1x96x16xf32, #tpu.memory_space<vmem>>, %arg2: memref<1x128x32xf32, #tpu.memory_space<vmem>>, %arg3: memref<1x32x64xf32, #tpu.memory_space<vmem>>, %arg4: memref<16x32xf32, #tpu.memory_space<vmem>>, %arg5: memref<224x32xf32, #tpu.memory_space<vmem>>, %arg6: memref<192x32xf32, #tpu.memory_space<vmem>>, %arg7: memref<128x32xf32, #tpu.memory_space<vmem>>, %arg8: memref<32x128xf32, #tpu.memory_space<vmem>>, %arg9: memref<1x128xf32, #tpu.memory_space<vmem>>, %arg10: memref<23x32xf32, #tpu.memory_space<vmem>>, %arg11: memref<1x32x128xf32, #tpu.memory_space<vmem>>) attributes {dimension_semantics = [#tpu.dimension_semantics<parallel>], iteration_bounds = array<i64: 4>, scalar_prefetch = 0 : i64, scratch_operands = 0 : i64, tpu.core_type = #tpu.core_type<tc>, window_params = [{transform_indices = @transform_0, window_bounds = array<i64: 1, 96, 16>}, {transform_indices = @transform_1, window_bounds = array<i64: 1, 128, 32>}, {transform_indices = @transform_2, window_bounds = array<i64: 1, 32, 64>}, {pipeline_mode = #tpu.pipeline_mode<synchronous>, transform_indices = @transform_3, window_bounds = array<i64: 16, 32>}, {pipeline_mode = #tpu.pipeline_mode<synchronous>, transform_indices = @transform_4, window_bounds = array<i64: 224, 32>}, {pipeline_mode = #tpu.pipeline_mode<synchronous>, transform_indices = @transform_5, window_bounds = array<i64: 192, 32>}, {pipeline_mode = #tpu.pipeline_mode<synchronous>, transform_indices = @transform_6, window_bounds = array<i64: 128, 32>}, {pipeline_mode = #tpu.pipeline_mode<synchronous>, transform_indices = @transform_7, window_bounds = array<i64: 32, 128>}, {pipeline_mode = #tpu.pipeline_mode<synchronous>, transform_indices = @transform_8, window_bounds = array<i64: 1, 128>}, {pipeline_mode = #tpu.pipeline_mode<synchronous>, transform_indices = @transform_9, window_bounds = array<i64: 23, 32>}, {transform_indices = @transform_10, window_bounds = array<i64: 1, 32, 128>}]} {
    %c0 = arith.constant 0 : index
    %c0_0 = arith.constant 0 : index
    %c0_1 = arith.constant 0 : index
    %0 = vector.load %arg1[%c0, %c0_0, %c0_1] : memref<1x96x16xf32, #tpu.memory_space<vmem>>, vector<1x96x16xf32>
    %1 = vector.shape_cast %0 : vector<1x96x16xf32> to vector<96x16xf32>
    %c0_2 = arith.constant 0 : index
    %c0_3 = arith.constant 0 : index
    %2 = vector.load %arg4[%c0_2, %c0_3] : memref<16x32xf32, #tpu.memory_space<vmem>>, vector<16x32xf32>
    %cst = arith.constant dense<0.000000e+00> : vector<96x32xf32>
    %3 = tpu.matmul %1, %2, %cst {dimension_numbers = #tpu.dot_dimension_numbers<[1], [0], [0], [1], [0, 0, 1, 1], [], []>} : vector<96x16xf32>, vector<16x32xf32>, vector<96x32xf32> -> vector<96x32xf32>
    %cst_4 = arith.constant 0.000000e+00 : f32
    %4 = vector.broadcast %cst_4 : f32 to vector<96x32xf32>
    %5 = arith.maximumf %3, %4 : vector<96x32xf32>
    %6 = vector.extract_strided_slice %5 {offsets = [0, 0], sizes = [32, 32], strides = [1, 1]} : vector<96x32xf32> to vector<32x32xf32>
    %c0_5 = arith.constant 0 : index
    %c0_6 = arith.constant 0 : index
    %7 = vector.load %arg5[%c0_5, %c0_6] : memref<224x32xf32, #tpu.memory_space<vmem>>, vector<32x32xf32>
    %cst_7 = arith.constant dense<0.000000e+00> : vector<32x32xf32>
    %8 = tpu.matmul %6, %7, %cst_7 {dimension_numbers = #tpu.dot_dimension_numbers<[1], [0], [0], [1], [0, 0, 1, 1], [], []>} : vector<32x32xf32>, vector<32x32xf32>, vector<32x32xf32> -> vector<32x32xf32>
    %c0_8 = arith.constant 0 : index
    %c0_9 = arith.constant 0 : index
    %9 = vector.load %arg10[%c0_8, %c0_9] : memref<23x32xf32, #tpu.memory_space<vmem>>, vector<1x32xf32>
    %10 = vector.broadcast %9 : vector<1x32xf32> to vector<32x32xf32>
    %11 = arith.addf %8, %10 : vector<32x32xf32>
    %c1 = arith.constant 1 : index
    %c0_10 = arith.constant 0 : index
    %12 = vector.load %arg10[%c1, %c0_10] : memref<23x32xf32, #tpu.memory_space<vmem>>, vector<1x32xf32>
    %c2 = arith.constant 2 : index
    %c0_11 = arith.constant 0 : index
    %13 = vector.load %arg10[%c2, %c0_11] : memref<23x32xf32, #tpu.memory_space<vmem>>, vector<1x32xf32>
    %cst_12 = arith.constant dense<0.000000e+00> : vector<32xf32>
    %14 = vector.multi_reduction <add>, %11, %cst_12 [1] : vector<32x32xf32> to vector<32xf32>
    %15 = vector.shape_cast %14 : vector<32xf32> to vector<32x1xf32>
    %cst_13 = arith.constant 3.200000e+01 : f32
    %16 = vector.broadcast %cst_13 : f32 to vector<32x1xf32>
    %17 = arith.divf %15, %16 : vector<32x1xf32>
    %18 = vector.broadcast %17 : vector<32x1xf32> to vector<32x32xf32>
    %19 = arith.subf %11, %18 : vector<32x32xf32>
    %20 = arith.mulf %19, %19 : vector<32x32xf32>
    %cst_14 = arith.constant dense<0.000000e+00> : vector<32xf32>
    %21 = vector.multi_reduction <add>, %20, %cst_14 [1] : vector<32x32xf32> to vector<32xf32>
    %22 = vector.shape_cast %21 : vector<32xf32> to vector<32x1xf32>
    %cst_15 = arith.constant 3.200000e+01 : f32
    %23 = vector.broadcast %cst_15 : f32 to vector<32x1xf32>
    %24 = arith.divf %22, %23 : vector<32x1xf32>
    %25 = vector.broadcast %17 : vector<32x1xf32> to vector<32x32xf32>
    %26 = arith.subf %11, %25 : vector<32x32xf32>
    %cst_16 = arith.constant 9.99999974E-6 : f32
    %27 = vector.broadcast %cst_16 : f32 to vector<32x1xf32>
    %28 = arith.addf %24, %27 : vector<32x1xf32>
    %29 = math.rsqrt %28 : vector<32x1xf32>
    %30 = vector.broadcast %29 : vector<32x1xf32> to vector<32x32xf32>
    %31 = arith.mulf %26, %30 : vector<32x32xf32>
    %32 = vector.broadcast %12 : vector<1x32xf32> to vector<32x32xf32>
    %33 = arith.mulf %31, %32 : vector<32x32xf32>
    %34 = vector.broadcast %13 : vector<1x32xf32> to vector<32x32xf32>
    %35 = arith.addf %33, %34 : vector<32x32xf32>
    %36 = vector.extract_strided_slice %5 {offsets = [32, 0], sizes = [64, 32], strides = [1, 1]} : vector<96x32xf32> to vector<64x32xf32>
    %c32 = arith.constant 32 : index
    %c0_17 = arith.constant 0 : index
    %37 = vector.load %arg5[%c32, %c0_17] : memref<224x32xf32, #tpu.memory_space<vmem>>, vector<32x32xf32>
    %cst_18 = arith.constant dense<0.000000e+00> : vector<64x32xf32>
    %38 = tpu.matmul %36, %37, %cst_18 {dimension_numbers = #tpu.dot_dimension_numbers<[1], [0], [0], [1], [0, 0, 1, 1], [], []>} : vector<64x32xf32>, vector<32x32xf32>, vector<64x32xf32> -> vector<64x32xf32>
    %c3 = arith.constant 3 : index
    %c0_19 = arith.constant 0 : index
    %39 = vector.load %arg10[%c3, %c0_19] : memref<23x32xf32, #tpu.memory_space<vmem>>, vector<1x32xf32>
    %40 = vector.broadcast %39 : vector<1x32xf32> to vector<64x32xf32>
    %41 = arith.addf %38, %40 : vector<64x32xf32>
    %c4 = arith.constant 4 : index
    %c0_20 = arith.constant 0 : index
    %42 = vector.load %arg10[%c4, %c0_20] : memref<23x32xf32, #tpu.memory_space<vmem>>, vector<1x32xf32>
    %c5 = arith.constant 5 : index
    %c0_21 = arith.constant 0 : index
    %43 = vector.load %arg10[%c5, %c0_21] : memref<23x32xf32, #tpu.memory_space<vmem>>, vector<1x32xf32>
    %cst_22 = arith.constant dense<0.000000e+00> : vector<64xf32>
    %44 = vector.multi_reduction <add>, %41, %cst_22 [1] : vector<64x32xf32> to vector<64xf32>
    %45 = vector.shape_cast %44 : vector<64xf32> to vector<64x1xf32>
    %cst_23 = arith.constant 3.200000e+01 : f32
    %46 = vector.broadcast %cst_23 : f32 to vector<64x1xf32>
    %47 = arith.divf %45, %46 : vector<64x1xf32>
    %48 = vector.broadcast %47 : vector<64x1xf32> to vector<64x32xf32>
    %49 = arith.subf %41, %48 : vector<64x32xf32>
    %50 = arith.mulf %49, %49 : vector<64x32xf32>
    %cst_24 = arith.constant dense<0.000000e+00> : vector<64xf32>
    %51 = vector.multi_reduction <add>, %50, %cst_24 [1] : vector<64x32xf32> to vector<64xf32>
    %52 = vector.shape_cast %51 : vector<64xf32> to vector<64x1xf32>
    %cst_25 = arith.constant 3.200000e+01 : f32
    %53 = vector.broadcast %cst_25 : f32 to vector<64x1xf32>
    %54 = arith.divf %52, %53 : vector<64x1xf32>
    %55 = vector.broadcast %47 : vector<64x1xf32> to vector<64x32xf32>
    %56 = arith.subf %41, %55 : vector<64x32xf32>
    %cst_26 = arith.constant 9.99999974E-6 : f32
    %57 = vector.broadcast %cst_26 : f32 to vector<64x1xf32>
    %58 = arith.addf %54, %57 : vector<64x1xf32>
    %59 = math.rsqrt %58 : vector<64x1xf32>
    %60 = vector.broadcast %59 : vector<64x1xf32> to vector<64x32xf32>
    %61 = arith.mulf %56, %60 : vector<64x32xf32>
    %62 = vector.broadcast %42 : vector<1x32xf32> to vector<64x32xf32>
    %63 = arith.mulf %61, %62 : vector<64x32xf32>
    %64 = vector.broadcast %43 : vector<1x32xf32> to vector<64x32xf32>
    %65 = arith.addf %63, %64 : vector<64x32xf32>
    %c0_27 = arith.constant 0 : index
    %c0_28 = arith.constant 0 : index
    %c0_29 = arith.constant 0 : index
    %66 = vector.load %arg2[%c0_27, %c0_28, %c0_29] : memref<1x128x32xf32, #tpu.memory_space<vmem>>, vector<1x128x32xf32>
    %67 = vector.shape_cast %66 : vector<1x128x32xf32> to vector<128x32xf32>
    %c0_30 = arith.constant 0 : index
    %c0_31 = arith.constant 0 : index
    %c0_32 = arith.constant 0 : index
    %68 = vector.load %arg3[%c0_30, %c0_31, %c0_32] : memref<1x32x64xf32, #tpu.memory_space<vmem>>, vector<1x32x64xf32>
    %69 = vector.shape_cast %68 : vector<1x32x64xf32> to vector<32x64xf32>
    %cst_33 = arith.constant dense<0.000000e+00> : vector<128x32xf32>
    %70 = tpu.matmul %67, %35, %cst_33 {dimension_numbers = #tpu.dot_dimension_numbers<[1], [0], [0], [1], [0, 0, 1, 1], [], []>} : vector<128x32xf32>, vector<32x32xf32>, vector<128x32xf32> -> vector<128x32xf32>
    %71 = vector.extract_strided_slice %70 {offsets = [0, 0], sizes = [64, 32], strides = [1, 1]} : vector<128x32xf32> to vector<64x32xf32>
    %72 = vector.extract_strided_slice %70 {offsets = [64, 0], sizes = [64, 32], strides = [1, 1]} : vector<128x32xf32> to vector<64x32xf32>
    %c0_34 = arith.constant 0 : index
    %c0_35 = arith.constant 0 : index
    %73 = vector.load %arg6[%c0_34, %c0_35] : memref<192x32xf32, #tpu.memory_space<vmem>>, vector<32x32xf32>
    %cst_36 = arith.constant dense<0.000000e+00> : vector<64x32xf32>
    %74 = tpu.matmul %71, %73, %cst_36 {dimension_numbers = #tpu.dot_dimension_numbers<[1], [0], [0], [1], [0, 0, 1, 1], [], []>} : vector<64x32xf32>, vector<32x32xf32>, vector<64x32xf32> -> vector<64x32xf32>
    %c32_37 = arith.constant 32 : index
    %c0_38 = arith.constant 0 : index
    %75 = vector.load %arg6[%c32_37, %c0_38] : memref<192x32xf32, #tpu.memory_space<vmem>>, vector<32x32xf32>
    %cst_39 = arith.constant dense<0.000000e+00> : vector<64x32xf32>
    %76 = tpu.matmul %72, %75, %cst_39 {dimension_numbers = #tpu.dot_dimension_numbers<[1], [0], [0], [1], [0, 0, 1, 1], [], []>} : vector<64x32xf32>, vector<32x32xf32>, vector<64x32xf32> -> vector<64x32xf32>
    %77 = arith.addf %74, %76 : vector<64x32xf32>
    %c64 = arith.constant 64 : index
    %c0_40 = arith.constant 0 : index
    %78 = vector.load %arg6[%c64, %c0_40] : memref<192x32xf32, #tpu.memory_space<vmem>>, vector<32x32xf32>
    %cst_41 = arith.constant dense<0.000000e+00> : vector<64x32xf32>
    %79 = tpu.matmul %65, %78, %cst_41 {dimension_numbers = #tpu.dot_dimension_numbers<[1], [0], [0], [1], [0, 0, 1, 1], [], []>} : vector<64x32xf32>, vector<32x32xf32>, vector<64x32xf32> -> vector<64x32xf32>
    %80 = arith.addf %77, %79 : vector<64x32xf32>
    %c7 = arith.constant 7 : index
    %c0_42 = arith.constant 0 : index
    %81 = vector.load %arg10[%c7, %c0_42] : memref<23x32xf32, #tpu.memory_space<vmem>>, vector<1x32xf32>
    %82 = vector.broadcast %81 : vector<1x32xf32> to vector<64x32xf32>
    %83 = arith.addf %80, %82 : vector<64x32xf32>
    %cst_43 = arith.constant 0.000000e+00 : f32
    %84 = vector.broadcast %cst_43 : f32 to vector<64x32xf32>
    %85 = arith.maximumf %83, %84 : vector<64x32xf32>
    %c96 = arith.constant 96 : index
    %c0_44 = arith.constant 0 : index
    %86 = vector.load %arg5[%c96, %c0_44] : memref<224x32xf32, #tpu.memory_space<vmem>>, vector<32x32xf32>
    %cst_45 = arith.constant dense<0.000000e+00> : vector<64x32xf32>
    %87 = tpu.matmul %85, %86, %cst_45 {dimension_numbers = #tpu.dot_dimension_numbers<[1], [0], [0], [1], [0, 0, 1, 1], [], []>} : vector<64x32xf32>, vector<32x32xf32>, vector<64x32xf32> -> vector<64x32xf32>
    %c8 = arith.constant 8 : index
    %c0_46 = arith.constant 0 : index
    %88 = vector.load %arg10[%c8, %c0_46] : memref<23x32xf32, #tpu.memory_space<vmem>>, vector<1x32xf32>
    %89 = vector.broadcast %88 : vector<1x32xf32> to vector<64x32xf32>
    %90 = arith.addf %87, %89 : vector<64x32xf32>
    %c9 = arith.constant 9 : index
    %c0_47 = arith.constant 0 : index
    %91 = vector.load %arg10[%c9, %c0_47] : memref<23x32xf32, #tpu.memory_space<vmem>>, vector<1x32xf32>
    %c10 = arith.constant 10 : index
    %c0_48 = arith.constant 0 : index
    %92 = vector.load %arg10[%c10, %c0_48] : memref<23x32xf32, #tpu.memory_space<vmem>>, vector<1x32xf32>
    %cst_49 = arith.constant dense<0.000000e+00> : vector<64xf32>
    %93 = vector.multi_reduction <add>, %90, %cst_49 [1] : vector<64x32xf32> to vector<64xf32>
    %94 = vector.shape_cast %93 : vector<64xf32> to vector<64x1xf32>
    %cst_50 = arith.constant 3.200000e+01 : f32
    %95 = vector.broadcast %cst_50 : f32 to vector<64x1xf32>
    %96 = arith.divf %94, %95 : vector<64x1xf32>
    %97 = vector.broadcast %96 : vector<64x1xf32> to vector<64x32xf32>
    %98 = arith.subf %90, %97 : vector<64x32xf32>
    %99 = arith.mulf %98, %98 : vector<64x32xf32>
    %cst_51 = arith.constant dense<0.000000e+00> : vector<64xf32>
    %100 = vector.multi_reduction <add>, %99, %cst_51 [1] : vector<64x32xf32> to vector<64xf32>
    %101 = vector.shape_cast %100 : vector<64xf32> to vector<64x1xf32>
    %cst_52 = arith.constant 3.200000e+01 : f32
    %102 = vector.broadcast %cst_52 : f32 to vector<64x1xf32>
    %103 = arith.divf %101, %102 : vector<64x1xf32>
    %104 = vector.broadcast %96 : vector<64x1xf32> to vector<64x32xf32>
    %105 = arith.subf %90, %104 : vector<64x32xf32>
    %cst_53 = arith.constant 9.99999974E-6 : f32
    %106 = vector.broadcast %cst_53 : f32 to vector<64x1xf32>
    %107 = arith.addf %103, %106 : vector<64x1xf32>
    %108 = math.rsqrt %107 : vector<64x1xf32>
    %109 = vector.broadcast %108 : vector<64x1xf32> to vector<64x32xf32>
    %110 = arith.mulf %105, %109 : vector<64x32xf32>
    %111 = vector.broadcast %91 : vector<1x32xf32> to vector<64x32xf32>
    %112 = arith.mulf %110, %111 : vector<64x32xf32>
    %113 = vector.broadcast %92 : vector<1x32xf32> to vector<64x32xf32>
    %114 = arith.addf %112, %113 : vector<64x32xf32>
    %115 = arith.addf %114, %65 : vector<64x32xf32>
    %cst_54 = arith.constant dense<0.000000e+00> : vector<32x32xf32>
    %116 = tpu.matmul %69, %115, %cst_54 {dimension_numbers = #tpu.dot_dimension_numbers<[1], [0], [0], [1], [0, 0, 1, 1], [], []>} : vector<32x64xf32>, vector<64x32xf32>, vector<32x32xf32> -> vector<32x32xf32>
    %c0_55 = arith.constant 0 : index
    %c0_56 = arith.constant 0 : index
    %117 = vector.load %arg7[%c0_55, %c0_56] : memref<128x32xf32, #tpu.memory_space<vmem>>, vector<32x32xf32>
    %cst_57 = arith.constant dense<0.000000e+00> : vector<32x32xf32>
    %118 = tpu.matmul %35, %117, %cst_57 {dimension_numbers = #tpu.dot_dimension_numbers<[1], [0], [0], [1], [0, 0, 1, 1], [], []>} : vector<32x32xf32>, vector<32x32xf32>, vector<32x32xf32> -> vector<32x32xf32>
    %c32_58 = arith.constant 32 : index
    %c0_59 = arith.constant 0 : index
    %119 = vector.load %arg7[%c32_58, %c0_59] : memref<128x32xf32, #tpu.memory_space<vmem>>, vector<32x32xf32>
    %cst_60 = arith.constant dense<0.000000e+00> : vector<32x32xf32>
    %120 = tpu.matmul %116, %119, %cst_60 {dimension_numbers = #tpu.dot_dimension_numbers<[1], [0], [0], [1], [0, 0, 1, 1], [], []>} : vector<32x32xf32>, vector<32x32xf32>, vector<32x32xf32> -> vector<32x32xf32>
    %121 = arith.addf %118, %120 : vector<32x32xf32>
    %c11 = arith.constant 11 : index
    %c0_61 = arith.constant 0 : index
    %122 = vector.load %arg10[%c11, %c0_61] : memref<23x32xf32, #tpu.memory_space<vmem>>, vector<1x32xf32>
    %123 = vector.broadcast %122 : vector<1x32xf32> to vector<32x32xf32>
    %124 = arith.addf %121, %123 : vector<32x32xf32>
    %cst_62 = arith.constant 0.000000e+00 : f32
    %125 = vector.broadcast %cst_62 : f32 to vector<32x32xf32>
    %126 = arith.maximumf %124, %125 : vector<32x32xf32>
    %c128 = arith.constant 128 : index
    %c0_63 = arith.constant 0 : index
    %127 = vector.load %arg5[%c128, %c0_63] : memref<224x32xf32, #tpu.memory_space<vmem>>, vector<32x32xf32>
    %cst_64 = arith.constant dense<0.000000e+00> : vector<32x32xf32>
    %128 = tpu.matmul %126, %127, %cst_64 {dimension_numbers = #tpu.dot_dimension_numbers<[1], [0], [0], [1], [0, 0, 1, 1], [], []>} : vector<32x32xf32>, vector<32x32xf32>, vector<32x32xf32> -> vector<32x32xf32>
    %c12 = arith.constant 12 : index
    %c0_65 = arith.constant 0 : index
    %129 = vector.load %arg10[%c12, %c0_65] : memref<23x32xf32, #tpu.memory_space<vmem>>, vector<1x32xf32>
    %130 = vector.broadcast %129 : vector<1x32xf32> to vector<32x32xf32>
    %131 = arith.addf %128, %130 : vector<32x32xf32>
    %c13 = arith.constant 13 : index
    %c0_66 = arith.constant 0 : index
    %132 = vector.load %arg10[%c13, %c0_66] : memref<23x32xf32, #tpu.memory_space<vmem>>, vector<1x32xf32>
    %c14 = arith.constant 14 : index
    %c0_67 = arith.constant 0 : index
    %133 = vector.load %arg10[%c14, %c0_67] : memref<23x32xf32, #tpu.memory_space<vmem>>, vector<1x32xf32>
    %cst_68 = arith.constant dense<0.000000e+00> : vector<32xf32>
    %134 = vector.multi_reduction <add>, %131, %cst_68 [1] : vector<32x32xf32> to vector<32xf32>
    %135 = vector.shape_cast %134 : vector<32xf32> to vector<32x1xf32>
    %cst_69 = arith.constant 3.200000e+01 : f32
    %136 = vector.broadcast %cst_69 : f32 to vector<32x1xf32>
    %137 = arith.divf %135, %136 : vector<32x1xf32>
    %138 = vector.broadcast %137 : vector<32x1xf32> to vector<32x32xf32>
    %139 = arith.subf %131, %138 : vector<32x32xf32>
    %140 = arith.mulf %139, %139 : vector<32x32xf32>
    %cst_70 = arith.constant dense<0.000000e+00> : vector<32xf32>
    %141 = vector.multi_reduction <add>, %140, %cst_70 [1] : vector<32x32xf32> to vector<32xf32>
    %142 = vector.shape_cast %141 : vector<32xf32> to vector<32x1xf32>
    %cst_71 = arith.constant 3.200000e+01 : f32
    %143 = vector.broadcast %cst_71 : f32 to vector<32x1xf32>
    %144 = arith.divf %142, %143 : vector<32x1xf32>
    %145 = vector.broadcast %137 : vector<32x1xf32> to vector<32x32xf32>
    %146 = arith.subf %131, %145 : vector<32x32xf32>
    %cst_72 = arith.constant 9.99999974E-6 : f32
    %147 = vector.broadcast %cst_72 : f32 to vector<32x1xf32>
    %148 = arith.addf %144, %147 : vector<32x1xf32>
    %149 = math.rsqrt %148 : vector<32x1xf32>
    %150 = vector.broadcast %149 : vector<32x1xf32> to vector<32x32xf32>
    %151 = arith.mulf %146, %150 : vector<32x32xf32>
    %152 = vector.broadcast %132 : vector<1x32xf32> to vector<32x32xf32>
    %153 = arith.mulf %151, %152 : vector<32x32xf32>
    %154 = vector.broadcast %133 : vector<1x32xf32> to vector<32x32xf32>
    %155 = arith.addf %153, %154 : vector<32x32xf32>
    %156 = arith.addf %35, %155 : vector<32x32xf32>
    %cst_73 = arith.constant dense<0.000000e+00> : vector<128x32xf32>
    %157 = tpu.matmul %67, %156, %cst_73 {dimension_numbers = #tpu.dot_dimension_numbers<[1], [0], [0], [1], [0, 0, 1, 1], [], []>} : vector<128x32xf32>, vector<32x32xf32>, vector<128x32xf32> -> vector<128x32xf32>
    %158 = vector.extract_strided_slice %157 {offsets = [0, 0], sizes = [64, 32], strides = [1, 1]} : vector<128x32xf32> to vector<64x32xf32>
    %159 = vector.extract_strided_slice %157 {offsets = [64, 0], sizes = [64, 32], strides = [1, 1]} : vector<128x32xf32> to vector<64x32xf32>
    %c96_74 = arith.constant 96 : index
    %c0_75 = arith.constant 0 : index
    %160 = vector.load %arg6[%c96_74, %c0_75] : memref<192x32xf32, #tpu.memory_space<vmem>>, vector<32x32xf32>
    %cst_76 = arith.constant dense<0.000000e+00> : vector<64x32xf32>
    %161 = tpu.matmul %158, %160, %cst_76 {dimension_numbers = #tpu.dot_dimension_numbers<[1], [0], [0], [1], [0, 0, 1, 1], [], []>} : vector<64x32xf32>, vector<32x32xf32>, vector<64x32xf32> -> vector<64x32xf32>
    %c128_77 = arith.constant 128 : index
    %c0_78 = arith.constant 0 : index
    %162 = vector.load %arg6[%c128_77, %c0_78] : memref<192x32xf32, #tpu.memory_space<vmem>>, vector<32x32xf32>
    %cst_79 = arith.constant dense<0.000000e+00> : vector<64x32xf32>
    %163 = tpu.matmul %159, %162, %cst_79 {dimension_numbers = #tpu.dot_dimension_numbers<[1], [0], [0], [1], [0, 0, 1, 1], [], []>} : vector<64x32xf32>, vector<32x32xf32>, vector<64x32xf32> -> vector<64x32xf32>
    %164 = arith.addf %161, %163 : vector<64x32xf32>
    %c160 = arith.constant 160 : index
    %c0_80 = arith.constant 0 : index
    %165 = vector.load %arg6[%c160, %c0_80] : memref<192x32xf32, #tpu.memory_space<vmem>>, vector<32x32xf32>
    %cst_81 = arith.constant dense<0.000000e+00> : vector<64x32xf32>
    %166 = tpu.matmul %115, %165, %cst_81 {dimension_numbers = #tpu.dot_dimension_numbers<[1], [0], [0], [1], [0, 0, 1, 1], [], []>} : vector<64x32xf32>, vector<32x32xf32>, vector<64x32xf32> -> vector<64x32xf32>
    %167 = arith.addf %164, %166 : vector<64x32xf32>
    %c15 = arith.constant 15 : index
    %c0_82 = arith.constant 0 : index
    %168 = vector.load %arg10[%c15, %c0_82] : memref<23x32xf32, #tpu.memory_space<vmem>>, vector<1x32xf32>
    %169 = vector.broadcast %168 : vector<1x32xf32> to vector<64x32xf32>
    %170 = arith.addf %167, %169 : vector<64x32xf32>
    %cst_83 = arith.constant 0.000000e+00 : f32
    %171 = vector.broadcast %cst_83 : f32 to vector<64x32xf32>
    %172 = arith.maximumf %170, %171 : vector<64x32xf32>
    %c160_84 = arith.constant 160 : index
    %c0_85 = arith.constant 0 : index
    %173 = vector.load %arg5[%c160_84, %c0_85] : memref<224x32xf32, #tpu.memory_space<vmem>>, vector<32x32xf32>
    %cst_86 = arith.constant dense<0.000000e+00> : vector<64x32xf32>
    %174 = tpu.matmul %172, %173, %cst_86 {dimension_numbers = #tpu.dot_dimension_numbers<[1], [0], [0], [1], [0, 0, 1, 1], [], []>} : vector<64x32xf32>, vector<32x32xf32>, vector<64x32xf32> -> vector<64x32xf32>
    %c16 = arith.constant 16 : index
    %c0_87 = arith.constant 0 : index
    %175 = vector.load %arg10[%c16, %c0_87] : memref<23x32xf32, #tpu.memory_space<vmem>>, vector<1x32xf32>
    %176 = vector.broadcast %175 : vector<1x32xf32> to vector<64x32xf32>
    %177 = arith.addf %174, %176 : vector<64x32xf32>
    %c17 = arith.constant 17 : index
    %c0_88 = arith.constant 0 : index
    %178 = vector.load %arg10[%c17, %c0_88] : memref<23x32xf32, #tpu.memory_space<vmem>>, vector<1x32xf32>
    %c18 = arith.constant 18 : index
    %c0_89 = arith.constant 0 : index
    %179 = vector.load %arg10[%c18, %c0_89] : memref<23x32xf32, #tpu.memory_space<vmem>>, vector<1x32xf32>
    %cst_90 = arith.constant dense<0.000000e+00> : vector<64xf32>
    %180 = vector.multi_reduction <add>, %177, %cst_90 [1] : vector<64x32xf32> to vector<64xf32>
    %181 = vector.shape_cast %180 : vector<64xf32> to vector<64x1xf32>
    %cst_91 = arith.constant 3.200000e+01 : f32
    %182 = vector.broadcast %cst_91 : f32 to vector<64x1xf32>
    %183 = arith.divf %181, %182 : vector<64x1xf32>
    %184 = vector.broadcast %183 : vector<64x1xf32> to vector<64x32xf32>
    %185 = arith.subf %177, %184 : vector<64x32xf32>
    %186 = arith.mulf %185, %185 : vector<64x32xf32>
    %cst_92 = arith.constant dense<0.000000e+00> : vector<64xf32>
    %187 = vector.multi_reduction <add>, %186, %cst_92 [1] : vector<64x32xf32> to vector<64xf32>
    %188 = vector.shape_cast %187 : vector<64xf32> to vector<64x1xf32>
    %cst_93 = arith.constant 3.200000e+01 : f32
    %189 = vector.broadcast %cst_93 : f32 to vector<64x1xf32>
    %190 = arith.divf %188, %189 : vector<64x1xf32>
    %191 = vector.broadcast %183 : vector<64x1xf32> to vector<64x32xf32>
    %192 = arith.subf %177, %191 : vector<64x32xf32>
    %cst_94 = arith.constant 9.99999974E-6 : f32
    %193 = vector.broadcast %cst_94 : f32 to vector<64x1xf32>
    %194 = arith.addf %190, %193 : vector<64x1xf32>
    %195 = math.rsqrt %194 : vector<64x1xf32>
    %196 = vector.broadcast %195 : vector<64x1xf32> to vector<64x32xf32>
    %197 = arith.mulf %192, %196 : vector<64x32xf32>
    %198 = vector.broadcast %178 : vector<1x32xf32> to vector<64x32xf32>
    %199 = arith.mulf %197, %198 : vector<64x32xf32>
    %200 = vector.broadcast %179 : vector<1x32xf32> to vector<64x32xf32>
    %201 = arith.addf %199, %200 : vector<64x32xf32>
    %202 = arith.addf %201, %115 : vector<64x32xf32>
    %cst_95 = arith.constant dense<0.000000e+00> : vector<32x32xf32>
    %203 = tpu.matmul %69, %202, %cst_95 {dimension_numbers = #tpu.dot_dimension_numbers<[1], [0], [0], [1], [0, 0, 1, 1], [], []>} : vector<32x64xf32>, vector<64x32xf32>, vector<32x32xf32> -> vector<32x32xf32>
    %c64_96 = arith.constant 64 : index
    %c0_97 = arith.constant 0 : index
    %204 = vector.load %arg7[%c64_96, %c0_97] : memref<128x32xf32, #tpu.memory_space<vmem>>, vector<32x32xf32>
    %cst_98 = arith.constant dense<0.000000e+00> : vector<32x32xf32>
    %205 = tpu.matmul %156, %204, %cst_98 {dimension_numbers = #tpu.dot_dimension_numbers<[1], [0], [0], [1], [0, 0, 1, 1], [], []>} : vector<32x32xf32>, vector<32x32xf32>, vector<32x32xf32> -> vector<32x32xf32>
    %c96_99 = arith.constant 96 : index
    %c0_100 = arith.constant 0 : index
    %206 = vector.load %arg7[%c96_99, %c0_100] : memref<128x32xf32, #tpu.memory_space<vmem>>, vector<32x32xf32>
    %cst_101 = arith.constant dense<0.000000e+00> : vector<32x32xf32>
    %207 = tpu.matmul %203, %206, %cst_101 {dimension_numbers = #tpu.dot_dimension_numbers<[1], [0], [0], [1], [0, 0, 1, 1], [], []>} : vector<32x32xf32>, vector<32x32xf32>, vector<32x32xf32> -> vector<32x32xf32>
    %208 = arith.addf %205, %207 : vector<32x32xf32>
    %c19 = arith.constant 19 : index
    %c0_102 = arith.constant 0 : index
    %209 = vector.load %arg10[%c19, %c0_102] : memref<23x32xf32, #tpu.memory_space<vmem>>, vector<1x32xf32>
    %210 = vector.broadcast %209 : vector<1x32xf32> to vector<32x32xf32>
    %211 = arith.addf %208, %210 : vector<32x32xf32>
    %cst_103 = arith.constant 0.000000e+00 : f32
    %212 = vector.broadcast %cst_103 : f32 to vector<32x32xf32>
    %213 = arith.maximumf %211, %212 : vector<32x32xf32>
    %c192 = arith.constant 192 : index
    %c0_104 = arith.constant 0 : index
    %214 = vector.load %arg5[%c192, %c0_104] : memref<224x32xf32, #tpu.memory_space<vmem>>, vector<32x32xf32>
    %cst_105 = arith.constant dense<0.000000e+00> : vector<32x32xf32>
    %215 = tpu.matmul %213, %214, %cst_105 {dimension_numbers = #tpu.dot_dimension_numbers<[1], [0], [0], [1], [0, 0, 1, 1], [], []>} : vector<32x32xf32>, vector<32x32xf32>, vector<32x32xf32> -> vector<32x32xf32>
    %c20 = arith.constant 20 : index
    %c0_106 = arith.constant 0 : index
    %216 = vector.load %arg10[%c20, %c0_106] : memref<23x32xf32, #tpu.memory_space<vmem>>, vector<1x32xf32>
    %217 = vector.broadcast %216 : vector<1x32xf32> to vector<32x32xf32>
    %218 = arith.addf %215, %217 : vector<32x32xf32>
    %c21 = arith.constant 21 : index
    %c0_107 = arith.constant 0 : index
    %219 = vector.load %arg10[%c21, %c0_107] : memref<23x32xf32, #tpu.memory_space<vmem>>, vector<1x32xf32>
    %c22 = arith.constant 22 : index
    %c0_108 = arith.constant 0 : index
    %220 = vector.load %arg10[%c22, %c0_108] : memref<23x32xf32, #tpu.memory_space<vmem>>, vector<1x32xf32>
    %cst_109 = arith.constant dense<0.000000e+00> : vector<32xf32>
    %221 = vector.multi_reduction <add>, %218, %cst_109 [1] : vector<32x32xf32> to vector<32xf32>
    %222 = vector.shape_cast %221 : vector<32xf32> to vector<32x1xf32>
    %cst_110 = arith.constant 3.200000e+01 : f32
    %223 = vector.broadcast %cst_110 : f32 to vector<32x1xf32>
    %224 = arith.divf %222, %223 : vector<32x1xf32>
    %225 = vector.broadcast %224 : vector<32x1xf32> to vector<32x32xf32>
    %226 = arith.subf %218, %225 : vector<32x32xf32>
    %227 = arith.mulf %226, %226 : vector<32x32xf32>
    %cst_111 = arith.constant dense<0.000000e+00> : vector<32xf32>
    %228 = vector.multi_reduction <add>, %227, %cst_111 [1] : vector<32x32xf32> to vector<32xf32>
    %229 = vector.shape_cast %228 : vector<32xf32> to vector<32x1xf32>
    %cst_112 = arith.constant 3.200000e+01 : f32
    %230 = vector.broadcast %cst_112 : f32 to vector<32x1xf32>
    %231 = arith.divf %229, %230 : vector<32x1xf32>
    %232 = vector.broadcast %224 : vector<32x1xf32> to vector<32x32xf32>
    %233 = arith.subf %218, %232 : vector<32x32xf32>
    %cst_113 = arith.constant 9.99999974E-6 : f32
    %234 = vector.broadcast %cst_113 : f32 to vector<32x1xf32>
    %235 = arith.addf %231, %234 : vector<32x1xf32>
    %236 = math.rsqrt %235 : vector<32x1xf32>
    %237 = vector.broadcast %236 : vector<32x1xf32> to vector<32x32xf32>
    %238 = arith.mulf %233, %237 : vector<32x32xf32>
    %239 = vector.broadcast %219 : vector<1x32xf32> to vector<32x32xf32>
    %240 = arith.mulf %238, %239 : vector<32x32xf32>
    %241 = vector.broadcast %220 : vector<1x32xf32> to vector<32x32xf32>
    %242 = arith.addf %240, %241 : vector<32x32xf32>
    %243 = arith.addf %156, %242 : vector<32x32xf32>
    %c64_114 = arith.constant 64 : index
    %c0_115 = arith.constant 0 : index
    %244 = vector.load %arg5[%c64_114, %c0_115] : memref<224x32xf32, #tpu.memory_space<vmem>>, vector<32x32xf32>
    %cst_116 = arith.constant dense<0.000000e+00> : vector<32x32xf32>
    %245 = tpu.matmul %243, %244, %cst_116 {dimension_numbers = #tpu.dot_dimension_numbers<[1], [0], [0], [1], [0, 0, 1, 1], [], []>} : vector<32x32xf32>, vector<32x32xf32>, vector<32x32xf32> -> vector<32x32xf32>
    %c6 = arith.constant 6 : index
    %c0_117 = arith.constant 0 : index
    %246 = vector.load %arg10[%c6, %c0_117] : memref<23x32xf32, #tpu.memory_space<vmem>>, vector<1x32xf32>
    %247 = vector.broadcast %246 : vector<1x32xf32> to vector<32x32xf32>
    %248 = arith.addf %245, %247 : vector<32x32xf32>
    %cst_118 = arith.constant 0.000000e+00 : f32
    %249 = vector.broadcast %cst_118 : f32 to vector<32x32xf32>
    %250 = arith.maximumf %248, %249 : vector<32x32xf32>
    %c0_119 = arith.constant 0 : index
    %c0_120 = arith.constant 0 : index
    %251 = vector.load %arg8[%c0_119, %c0_120] : memref<32x128xf32, #tpu.memory_space<vmem>>, vector<32x128xf32>
    %cst_121 = arith.constant dense<0.000000e+00> : vector<32x128xf32>
    %252 = tpu.matmul %250, %251, %cst_121 {dimension_numbers = #tpu.dot_dimension_numbers<[1], [0], [0], [1], [0, 0, 1, 1], [], []>} : vector<32x32xf32>, vector<32x128xf32>, vector<32x128xf32> -> vector<32x128xf32>
    %c0_122 = arith.constant 0 : index
    %c0_123 = arith.constant 0 : index
    %253 = vector.load %arg9[%c0_122, %c0_123] : memref<1x128xf32, #tpu.memory_space<vmem>>, vector<1x128xf32>
    %254 = vector.broadcast %253 : vector<1x128xf32> to vector<32x128xf32>
    %255 = arith.addf %252, %254 : vector<32x128xf32>
    %c0_124 = arith.constant 0 : index
    %c0_125 = arith.constant 0 : index
    %c0_126 = arith.constant 0 : index
    %256 = vector.load %arg11[%c0_124, %c0_125, %c0_126] : memref<1x32x128xf32, #tpu.memory_space<vmem>>, vector<1x32x128xf32>
    %257 = vector.shape_cast %256 : vector<1x32x128xf32> to vector<32x128xf32>
    %258 = vector.shape_cast %255 : vector<32x128xf32> to vector<1x32x128xf32>
    tpu.vector_store %arg11[%c0_124, %c0_125, %c0_126], %258 {strides = array<i32>} : memref<1x32x128xf32, #tpu.memory_space<vmem>>, vector<1x32x128xf32>,
    return
  }
  func.func @transform_0(%arg0: i32) -> (i32, i32, i32) {
    %c0_i32 = arith.constant 0 : i32
    %c0_i32_0 = arith.constant 0 : i32
    %c0_i32_1 = arith.constant 0 : i32
    return %arg0, %c0_i32, %c0_i32_0 : i32, i32, i32
  }
  func.func @transform_1(%arg0: i32) -> (i32, i32, i32) {
    %c0_i32 = arith.constant 0 : i32
    %c0_i32_0 = arith.constant 0 : i32
    %c0_i32_1 = arith.constant 0 : i32
    return %arg0, %c0_i32, %c0_i32_0 : i32, i32, i32
  }
  func.func @transform_2(%arg0: i32) -> (i32, i32, i32) {
    %c0_i32 = arith.constant 0 : i32
    %c0_i32_0 = arith.constant 0 : i32
    %c0_i32_1 = arith.constant 0 : i32
    return %arg0, %c0_i32, %c0_i32_0 : i32, i32, i32
  }
  func.func @transform_3(%arg0: i32) -> (i32, i32) {
    %c0_i32 = arith.constant 0 : i32
    %c0_i32_0 = arith.constant 0 : i32
    %c0_i32_1 = arith.constant 0 : i32
    return %c0_i32, %c0_i32_0 : i32, i32
  }
  func.func @transform_4(%arg0: i32) -> (i32, i32) {
    %c0_i32 = arith.constant 0 : i32
    %c0_i32_0 = arith.constant 0 : i32
    %c0_i32_1 = arith.constant 0 : i32
    return %c0_i32, %c0_i32_0 : i32, i32
  }
  func.func @transform_5(%arg0: i32) -> (i32, i32) {
    %c0_i32 = arith.constant 0 : i32
    %c0_i32_0 = arith.constant 0 : i32
    %c0_i32_1 = arith.constant 0 : i32
    return %c0_i32, %c0_i32_0 : i32, i32
  }
  func.func @transform_6(%arg0: i32) -> (i32, i32) {
    %c0_i32 = arith.constant 0 : i32
    %c0_i32_0 = arith.constant 0 : i32
    %c0_i32_1 = arith.constant 0 : i32
    return %c0_i32, %c0_i32_0 : i32, i32
  }
  func.func @transform_7(%arg0: i32) -> (i32, i32) {
    %c0_i32 = arith.constant 0 : i32
    %c0_i32_0 = arith.constant 0 : i32
    %c0_i32_1 = arith.constant 0 : i32
    return %c0_i32, %c0_i32_0 : i32, i32
  }
  func.func @transform_8(%arg0: i32) -> (i32, i32) {
    %c0_i32 = arith.constant 0 : i32
    %c0_i32_0 = arith.constant 0 : i32
    %c0_i32_1 = arith.constant 0 : i32
    return %c0_i32, %c0_i32_0 : i32, i32
  }
  func.func @transform_9(%arg0: i32) -> (i32, i32) {
    %c0_i32 = arith.constant 0 : i32
    %c0_i32_0 = arith.constant 0 : i32
    %c0_i32_1 = arith.constant 0 : i32
    return %c0_i32, %c0_i32_0 : i32, i32
  }
  func.func @transform_10(%arg0: i32) -> (i32, i32, i32) {
    %c0_i32 = arith.constant 0 : i32
    %c0_i32_0 = arith.constant 0 : i32
    %c0_i32_1 = arith.constant 0 : i32
    return %arg0, %c0_i32, %c0_i32_0 : i32, i32, i32
  }
}

</mosaic_0001>

<bundles_post_ra>
// kernel: mesh_graph_net_forward_batched.1
= control target key start
LH: loop header
LB: loop body
LE: loop exit
PB: predicated region body
PF: predicated region fallthrough
CT: control target
= control target key end

     0   :  { %s5365_s13 = smov 0   ;;  %s6264_s0 = inlined_call_operand.vmem [shape: f32[4,96,16], index: 0, kind: input, shape index: {}]   ;;  %s6265_s1 = inlined_call_operand.vmem [shape: f32[4,128,32], index: 1, kind: input, shape index: {}]   ;;  %s6266_s2 = inlined_call_operand.vmem [shape: f32[4,32,64], index: 2, kind: input, shape index: {}]   ;;  %s6267_s3 = inlined_call_operand.vmem [shape: f32[16,32], index: 3, kind: input, shape index: {}]   ;;  %s6268_s4 = inlined_call_operand.vmem [shape: f32[224,32], index: 4, kind: input, shape index: {}]   ;;  %s6269_s5 = inlined_call_operand.vmem [shape: f32[192,32], index: 5, kind: input, shape index: {}]   ;;  %s6270_s6 = inlined_call_operand.vmem [shape: f32[128,32], index: 6, kind: input, shape index: {}]   ;;  %s6271_s7 = inlined_call_operand.vmem [shape: f32[32,128], index: 7, kind: input, shape index: {}]   ;;  %s6272_s8 = inlined_call_operand.vmem [shape: f32[1,128], index: 8, kind: input, shape index: {}]   ;;  %s6273_s9 = inlined_call_operand.vmem [shape: f32[23,32], index: 9, kind: input, shape index: {}]   ;;  %s6274_s10 = inlined_call_operand.vmem [shape: f32[4,32,128], index: 10, kind: output, shape index: {}]  }
   0x1 LB: > { %s4074_s14 = sadd.s32 4294967295, %s5308_s13   ;;  %p4078_p0 = scmp.ge.s32.totalorder %s5308_s13, 1  ;;  %s5308_s13 = sphi %s5365_s13, %s20_s13  }
   0x2   : > { %p332_p1 = scmp.lt.s32.totalorder %s5308_s13, 5 }
   0x4   : > { %p333_p2 = pnand %p4078_p0, %p332_p1 }
   0x5   : > { %v412_v0 = vld [vmem:[%s6267_s3] sm:$0xff] (!%p333_p2)  ;;  %v413_v1 = vld [vmem:[%s6267_s3 + $0x8] sm:$0xff] (!%p333_p2)  ;;  %p380_p3 = scmp.lt.s32.totalorder (!%p333_p2), %s4074_s14, 3  ;;  %vm414_vm0 = vcmask (!%p333_p2), 130048   ;;  %v590_v18 = vld [vmem:[%s6268_s4 + $0x10] sm:$0xff] (!%p333_p2)  ;;  %vm597_vm1 = vcmask (!%p333_p2), 261120  }
   0x6   : > { %336 = sbr.rel (%p333_p2) target bundleno = 5223 (0x1467), region = 60  ;;  %v588_v2 = vld [vmem:[%s6268_s4] sm:$0xff] (!%p333_p2)  ;;  %v4969_v3 = vpack.c.bf16 (!%p333_p2), %v413_v1, %v412_v0  ;;  %v589_v4 = vld [vmem:[%s6268_s4 + $0x8] sm:$0xff] (!%p333_p2)  ;;  %v591_v19 = vld [vmem:[%s6268_s4 + $0x18] sm:$0xff] (!%p333_p2)  ;;  %vm1951_vm2 = vcmask (!%p333_p2), 523264  }
   0x7   : > { %v4973_v5 = vpack.c.bf16 (!%p333_p2), %v589_v4, %v588_v2  ;;  %v4977_v20 = vpack.c.bf16 (!%p333_p2), %v591_v19, %v590_v18  ;;  %v766_v21 = vld [vmem:[%s6268_s4 + $0x20] sm:$0xff] (!%p333_p2)  ;;  %v767_v22 = vld [vmem:[%s6268_s4 + $0x28] sm:$0xff] (!%p333_p2)  ;;  %v768_v25 = vld [vmem:[%s6268_s4 + $0x30] sm:$0xff] (!%p333_p2) }
   0x8   : > { %4970 = vmatprep.subr.bf16.mxu0 (!%p333_p2), %v4969_v3  ;;  %v4981_v23 = vpack.c.bf16 (!%p333_p2), %v767_v22, %v766_v21  ;;  %v769_v26 = vld [vmem:[%s6268_s4 + $0x38] sm:$0xff] (!%p333_p2)  ;;  %v4098_v51 = vld [vmem:[%s6273_s9] ss:$0 sm:$0xff] (!%p333_p2) }
   0x9   : > { %4972 = vmatpush3.bf16.msra.mxu0 (!%p333_p2), %v4969_v3  ;;  %4974 = vmatprep.subr.bf16.mxu1 (!%p333_p2), %v4973_v5  ;;  %v4985_v30 = vpack.c.bf16 (!%p333_p2), %v769_v26, %v768_v25 }
   0xa   : > { %4976 = vmatpush3.bf16.msra.mxu1 (!%p333_p2), %v4973_v5 }
   0xb   : > { %4978 = vmatprep.subr.bf16.mxu1 (!%p333_p2), %v4977_v20 }
   0xd   : > { %s6276_s14 = smov (!%p380_p3, %s4074_s14), 3 }
   0xe   : > { %s5205_s23 = smul.u32 96, %s6276_s14  ;;  %4980 = vmatpush3.bf16.msra.mxu1 %v4977_v20  ;;  %s4272_s25 = sshll.u32 %s6276_s14, 7 }
   0xf   : > { %4982 = vmatprep.subr.bf16.mxu1 %v4981_v23  ;;  %s5484_s28 = scalar_lea.vmem %s6265_s1, %s4272_s25  ;;  %s4273_s21 = sshll.u32 %s6276_s14, 5 }
  0x10   : > { %s384_s26 = scalar_lea.vmem %s6264_s0, %s5205_s23  ;;  %s5782_s24 = scalar_lea.vmem %s6266_s2, %s4273_s21 }
  0x11   : > { %v400_v6 = vld [vmem:[%s384_s26] sm:$0xff]  ;;  %v401_v7 = vld [vmem:[%s384_s26 + $0x8] sm:$0xff]  ;;  %v402_v8 = vld [vmem:[%s384_s26 + $0x10] sm:$0xff]  ;;  %s399_s20 = scalar_lea.vmem %s6274_s10, %s4273_s21 }
  0x12   : > { %4537 = vmatprep.mubr.msk.f32.mxu0 %vm414_vm0, %v400_v6  ;;  %v403_v9 = vld [vmem:[%s384_s26 + $0x18] sm:$0xff]  ;;  %v404_v10 = vld [vmem:[%s384_s26 + $0x20] sm:$0xff]  ;;  %v405_v11 = vld [vmem:[%s384_s26 + $0x28] sm:$0xff] }
  0x13   : > { %4538 = vmatmul.mubr.msk.f32.vlgmr.msra.gmra.mrb[0].mxu0 %vm414_vm0, %v401_v7  ;;  %v406_v12 = vld [vmem:[%s384_s26 + $0x30] sm:$0xff]  ;;  %v407_v13 = vld [vmem:[%s384_s26 + $0x38] sm:$0xff]  ;;  %v408_v14 = vld [vmem:[%s384_s26 + $0x40] sm:$0xff] }
  0x14   : > { %4540 = vmatprep.mubr.msk.f32.mxu0 %vm414_vm0, %v402_v8  ;;  %v409_v15 = vld [vmem:[%s384_s26 + $0x48] sm:$0xff]  ;;  %v410_v16 = vld [vmem:[%s384_s26 + $0x50] sm:$0xff]  ;;  %v411_v17 = vld [vmem:[%s384_s26 + $0x58] sm:$0xff] }
  0x17   : > { %4541 = vmatmul.mubr.msk.f32.gmra.mrb[2].mxu0 %vm414_vm0, %v403_v9 }
  0x18   : > { %4543 = vmatprep.mubr.msk.f32.mxu0 %vm414_vm0, %v404_v10 }
  0x1b   : > { %4544 = vmatmul.mubr.msk.f32.gmra.mrb[4].mxu0 %vm414_vm0, %v405_v11 }
  0x1c   : > { %4546 = vmatprep.mubr.msk.f32.mxu0 %vm414_vm0, %v406_v12 }
  0x1f   : > { %4547 = vmatmul.mubr.msk.f32.gmra.mrb[6].mxu0 %vm414_vm0, %v407_v13 }
  0x20   : > { %4549 = vmatprep.mubr.msk.f32.mxu0 %vm414_vm0, %v408_v14 }
  0x23   : > { %4550 = vmatmul.mubr.msk.f32.gmra.mrb[8].mxu0 %vm414_vm0, %v409_v15 }
  0x24   : > { %4552 = vmatprep.mubr.msk.f32.mxu0 %vm414_vm0, %v410_v16  ;;  %v4105_v16 = vld [vmem:[%s6273_s9 + $0x3] ss:$0 sm:$0xff] }
  0x27   : > { %4553 = vmatmul.mubr.msk.f32.gmra.mrb[10].mxu0 %vm414_vm0, %v411_v17 }
  0xe6   : > { %v4539_v24 = vpop.f32.mrb[0].mxu0 }
  0xe7   : > { %v517_v27 = vpop.f32.mrb[1].mxu0  ;;  %v577_v29 = vmax.f32 %v4539_v24, 0.0 }
  0xe8   : > { %v576_v28 = vmax.f32 %v517_v27, 0.0 }
  0xea   : > { %v4542_v31 = vpop.f32.mrb[2].mxu0  ;;  %4563 = vmatprep.mubr.msk.f32.mxu1 %vm597_vm1, %v576_v28 }
  0xeb   : > { %v527_v32 = vpop.f32.mrb[3].mxu0  ;;  %4564 = vmatmul.mubr.msk.f32.vlgmr.msra.gmra.mrb[0].mxu1 %vm597_vm1, %v577_v29  ;;  %v579_v34 = vmax.f32 %v4542_v31, 0.0 }
  0xec   : > { %v578_v33 = vmax.f32 %v527_v32, 0.0  ;;  %4984 = vmatpush3.bf16.msra.mxu1 %v4981_v23 }
  0xed   : > { %4986 = vmatprep.subr.bf16.mxu1 %v4985_v30 }
  0xee   : > { %4566 = vmatprep.mubr.msk.f32.mxu1 %vm597_vm1, %v578_v33  ;;  %v4545_v35 = vpop.f32.mrb[4].mxu0 }
  0xef   : > { %4567 = vmatmul.mubr.msk.f32.gmra.mrb[2].mxu1 %vm597_vm1, %v579_v34  ;;  %v581_v36 = vmax.f32 %v4545_v35, 0.0  ;;  %v537_v37 = vpop.f32.mrb[5].mxu0 }
  0xf0   : > { %v580_v38 = vmax.f32 %v537_v37, 0.0  ;;  %4988 = vmatpush3.bf16.msra.mxu1 %v4985_v30 }
  0xf2   : > { %v4548_v39 = vpop.f32.mrb[6].mxu0  ;;  %4577 = vmatprep.mubr.msk.f32.mxu1 %vm597_vm1, %v580_v38 }
  0xf3   : > { %v583_v40 = vmax.f32 %v4548_v39, 0.0  ;;  %v547_v41 = vpop.f32.mrb[7].mxu0  ;;  %4578 = vmatmul.mubr.msk.f32.vlgmr.msra.gmra.mrb[4].mxu1 %vm597_vm1, %v581_v36 }
  0xf4   : > { %v582_v42 = vmax.f32 %v547_v41, 0.0 }
  0xf6   : > { %v4551_v43 = vpop.f32.mrb[8].mxu0  ;;  %4580 = vmatprep.mubr.msk.f32.mxu1 %vm597_vm1, %v582_v42 }
  0xf7   : > { %v585_v44 = vmax.f32 %v4551_v43, 0.0  ;;  %v557_v45 = vpop.f32.mrb[9].mxu0  ;;  %4581 = vmatmul.mubr.msk.f32.gmra.mrb[6].mxu1 %vm597_vm1, %v583_v40 }
  0xf8   : > { %v584_v46 = vmax.f32 %v557_v45, 0.0  ;;  %v1034_v45 = vld [vmem:[%s5484_s28] sm:$0xff] }
  0xf9   : > { %4597 = vmatprep.mubr.msk.f32.mxu0 %vm597_vm1, %v1034_v45 }
  0xfa   : > { %v4554_v47 = vpop.f32.mrb[10].mxu0  ;;  %4583 = vmatprep.mubr.msk.f32.mxu1 %vm597_vm1, %v584_v46 }
  0xfb   : > { %v587_v48 = vmax.f32 %v4554_v47, 0.0  ;;  %v567_v49 = vpop.f32.mrb[11].mxu0  ;;  %4584 = vmatmul.mubr.msk.f32.gmra.mrb[8].mxu1 %vm597_vm1, %v585_v44 }
  0xfc   : > { %v586_v50 = vmax.f32 %v567_v49, 0.0 }
  0xfe   : > { %4586 = vmatprep.mubr.msk.f32.mxu1 %vm597_vm1, %v586_v50 }
  0xff   : > { %4587 = vmatmul.mubr.msk.f32.gmra.mrb[10].mxu1 %vm597_vm1, %v587_v48 }
 0x1be   : > { %v4565_v52 = vpop.f32.mrb[0].mxu1 }
 0x1bf   : > { %v676_v53 = vpop.f32.mrb[1].mxu1  ;;  %v682_v55 = vadd.f32 %v4565_v52, %v4098_v51 }
 0x1c0   : > { %v677_v54 = vadd.f32 %v4098_v51, %v676_v53 }
 0x1c1   : > { %v700_v61 = vsel %vm597_vm1, %v682_v55, 0.0 }
 0x1c2   : > { %v4568_v56 = vpop.f32.mrb[2].mxu1  ;;  %v697_v57 = vsel %vm597_vm1, %v677_v54, 0.0 }
 0x1c3   : > { %698 = vadd.xlane.f32.xlu0 %v697_v57  ;;  %v686_v58 = vpop.f32.mrb[3].mxu1  ;;  %v692_v60 = vadd.f32 %v4568_v56, %v4098_v51 }
 0x1c4   : > { %v687_v59 = vadd.f32 %v4098_v51, %v686_v58 }
 0x1c5   : > { %v706_v63 = vsel %vm597_vm1, %v692_v60, 0.0 }
 0x1c6   : > { %v703_v62 = vsel %vm597_vm1, %v687_v59, 0.0  ;;  %v4579_v0 = vpop.f32.mrb[4].mxu1 }
 0x1c7   : > { %701 = vadd.xlane.f32.xlu0 %v700_v61  ;;  %704 = vadd.xlane.f32.xlu1 %v703_v62  ;;  %v865_v1 = vpop.f32.mrb[5].mxu1  ;;  %v871_v28 = vadd.f32 %v4579_v0, %v4105_v16 }
 0x1c8   : > { %v866_v24 = vadd.f32 %v4105_v16, %v865_v1 }
 0x1c9   : > { %v909_v34 = vsel %vm597_vm1, %v871_v28, 0.0 }
 0x1ca   : > { %v4582_v2 = vpop.f32.mrb[6].mxu1  ;;  %v906_v30 = vsel %vm597_vm1, %v866_v24, 0.0 }
 0x1cb   : > { %707 = vadd.xlane.f32.xlu1 %v706_v63  ;;  %v875_v3 = vpop.f32.mrb[7].mxu1  ;;  %v881_v33 = vadd.f32 %v4582_v2, %v4105_v16 }
 0x1cc   : > { %v876_v31 = vadd.f32 %v4105_v16, %v875_v3 }
 0x1cd   : > { %v915_v38 = vsel %vm597_vm1, %v881_v33, 0.0 }
 0x1ce   : > { %v4585_v4 = vpop.f32.mrb[8].mxu1  ;;  %v912_v35 = vsel %vm597_vm1, %v876_v31, 0.0 }
 0x1cf   : > { %v885_v5 = vpop.f32.mrb[9].mxu1  ;;  %v5466_v37 = vadd.f32 %v4585_v4, %v4105_v16 }
 0x1d0   : > { %v886_v36 = vadd.f32 %v4105_v16, %v885_v5 }
 0x1d1   : > { %v921_v42 = vsel %vm597_vm1, %v5466_v37, 0.0 }
 0x1d2   : > { %v4588_v6 = vpop.f32.mrb[10].mxu1  ;;  %v918_v39 = vsel %vm597_vm1, %v886_v36, 0.0 }
 0x1d3   : > { %v895_v7 = vpop.f32.mrb[11].mxu1  ;;  %v5472_v41 = vadd.f32 %v4588_v6, %v4105_v16 }
 0x1d4   : > { %v5470_v40 = vadd.f32 %v4105_v16, %v895_v7 }
 0x1d5   : > { %v927_v44 = vsel %vm597_vm1, %v5472_v41, 0.0 }
 0x1d6   : > { %v924_v43 = vsel %vm597_vm1, %v5470_v40, 0.0 }
 0x250   : > { %v699_v8 = vpop.xlane.xlu0 %698 }
 0x251   : > { %v710_v9 = vmul.f32 0.03125, %v699_v8 }
 0x253   : > { %v5440_v10 = vsub.f32 %v677_v54, %v710_v9 }
 0x254   : > { %v702_v11 = vpop.xlane.xlu0 %701  ;;  %v705_v12 = vpop.xlane.xlu1 %704 }
 0x255   : > { %v711_v13 = vmul.f32 0.03125, %v702_v11  ;;  %v712_v14 = vmul.f32 0.03125, %v705_v12  ;;  %v718_v15 = vmul.f32 %v5440_v10, %v5440_v10 }
 0x257   : > { %v5447_v17 = vsub.f32 %v682_v55, %v711_v13  ;;  %v5449_v18 = vsub.f32 %v687_v59, %v712_v14  ;;  %v722_v19 = vsel %vm597_vm1, %v718_v15, 0.0 }
 0x258   : > { %723 = vadd.xlane.f32.xlu0 %v722_v19  ;;  %v708_v20 = vpop.xlane.xlu1 %707 }
 0x259   : > { %v713_v21 = vmul.f32 0.03125, %v708_v20  ;;  %v719_v22 = vmul.f32 %v5447_v17, %v5447_v17  ;;  %v720_v23 = vmul.f32 %v5449_v18, %v5449_v18 }
 0x25b   : > { %v5456_v25 = vsub.f32 %v692_v60, %v713_v21  ;;  %v725_v26 = vsel %vm597_vm1, %v719_v22, 0.0  ;;  %v728_v27 = vsel %vm597_vm1, %v720_v23, 0.0  ;;  %v4103_v21 = vld [vmem:[%s6273_s9 + $0x1] ss:$0 sm:$0xff] }
 0x25c   : > { %726 = vadd.xlane.f32.xlu1 %v725_v26  ;;  %729 = vadd.xlane.f32.xlu0 %v728_v27 }
 0x25d   : > { %v721_v29 = vmul.f32 %v5456_v25, %v5456_v25 }
 0x25f   : > { %v731_v32 = vsel %vm597_vm1, %v721_v29, 0.0 }
 0x260   : > { %732 = vadd.xlane.f32.xlu1 %v731_v32  ;;  %907 = vadd.xlane.f32.xlu0 %v906_v30 }
 0x264   : > { %910 = vadd.xlane.f32.xlu1 %v909_v34  ;;  %913 = vadd.xlane.f32.xlu0 %v912_v35 }
 0x268   : > { %916 = vadd.xlane.f32.xlu1 %v915_v38  ;;  %919 = vadd.xlane.f32.xlu0 %v918_v39 }
 0x26c   : > { %922 = vadd.xlane.f32.xlu1 %v921_v42  ;;  %925 = vadd.xlane.f32.xlu0 %v924_v43 }
 0x270   : > { %928 = vadd.xlane.f32.xlu1 %v927_v44 }
 0x2e5   : > { %v724_v46 = vpop.xlane.xlu0 %723 }
 0x2e6   : > { %v734_v47 = vmul.f32 0.03125, %v724_v46 }
 0x2e8   : > { %v738_v48 = vadd.f32 1e-05, %v734_v47 }
 0x2e9   : > { %v730_v49 = vpop.xlane.xlu0 %729  ;;  %v727_v50 = vpop.xlane.xlu1 %726 }
 0x2ea   : > { %5214 = vrsqrt.f32 %v738_v48  ;;  %v736_v51 = vmul.f32 0.03125, %v730_v49  ;;  %v735_v52 = vmul.f32 0.03125, %v727_v50 }
 0x2ec   : > { %v740_v53 = vadd.f32 1e-05, %v736_v51  ;;  %v739_v54 = vadd.f32 1e-05, %v735_v52 }
 0x2ed   : > { %v733_v55 = vpop.xlane.xlu1 %732  ;;  %v908_v56 = vpop.xlane.xlu0 %907 }
 0x2ee   : > { %5216 = vrsqrt.f32 %v740_v53  ;;  %v737_v57 = vmul.f32 0.03125, %v733_v55  ;;  %v930_v58 = vmul.f32 0.03125, %v908_v56  ;;  %v1036_v55 = vld [vmem:[%s5484_s28 + $0x10] sm:$0xff]  ;;  %v1037_v56 = vld [vmem:[%s5484_s28 + $0x18] sm:$0xff] }
 0x2ef   : > { %5218 = vrsqrt.f32 %v739_v54  ;;  %v1035_v54 = vld [vmem:[%s5484_s28 + $0x8] sm:$0xff] }
 0x2f0   : > { %v741_v59 = vadd.f32 1e-05, %v737_v57  ;;  %v5488_v60 = vsub.f32 %v866_v24, %v930_v58  ;;  %v1038_v57 = vld [vmem:[%s5484_s28 + $0x20] sm:$0xff]  ;;  %v1039_v58 = vld [vmem:[%s5484_s28 + $0x28] sm:$0xff] }
 0x2f1   : > { %v911_v61 = vpop.xlane.xlu1 %910  ;;  %v914_v62 = vpop.xlane.xlu0 %913 }
 0x2f2   : > { %5220 = vrsqrt.f32 %v741_v59  ;;  %v931_v63 = vmul.f32 0.03125, %v911_v61  ;;  %v932_v0 = vmul.f32 0.03125, %v914_v62  ;;  %v946_v1 = vmul.f32 %v5488_v60, %v5488_v60  ;;  %v1040_v59 = vld [vmem:[%s5484_s28 + $0x30] sm:$0xff]  ;;  %v1041_v61 = vld [vmem:[%s5484_s28 + $0x38] sm:$0xff]  ;;  %v1042_v62 = vld [vmem:[%s5484_s28 + $0x40] sm:$0xff] }
 0x2f4   : > { %v5215_v2 = vpop.eup %5214  ;;  %v5492_v3 = vsub.f32 %v871_v28, %v931_v63  ;;  %v5494_v4 = vsub.f32 %v876_v31, %v932_v0  ;;  %v954_v5 = vsel %vm597_vm1, %v946_v1, 0.0  ;;  %v1043_v63 = vld [vmem:[%s5484_s28 + $0x48] sm:$0xff]  ;;  %v1044_v0 = vld [vmem:[%s5484_s28 + $0x50] sm:$0xff]  ;;  %v1045_v1 = vld [vmem:[%s5484_s28 + $0x58] sm:$0xff] }
 0x2f5   : > { %v917_v6 = vpop.xlane.xlu1 %916  ;;  %v920_v7 = vpop.xlane.xlu0 %919  ;;  %955 = vadd.xlane.f32.xlu0 %v954_v5  ;;  %v746_v13 = vmul.f32 %v5215_v2, %v5440_v10  ;;  %v1046_v2 = vld [vmem:[%s5484_s28 + $0x60] sm:$0xff]  ;;  %v1047_v5 = vld [vmem:[%s5484_s28 + $0x68] sm:$0xff] }
 0x2f6   : > { %v933_v8 = vmul.f32 0.03125, %v917_v6  ;;  %v934_v9 = vmul.f32 0.03125, %v920_v7  ;;  %v947_v11 = vmul.f32 %v5492_v3, %v5492_v3  ;;  %v948_v12 = vmul.f32 %v5494_v4, %v5494_v4  ;;  %v1048_v6 = vld [vmem:[%s5484_s28 + $0x70] sm:$0xff]  ;;  %v1049_v7 = vld [vmem:[%s5484_s28 + $0x78] sm:$0xff] }
 0x2f7   : > { %v754_v31 = vmul.f32 %v4103_v21, %v746_v13  ;;  %v1254_v13 = vld [vmem:[%s6269_s5 + $0x38] sm:$0xff] }
 0x2f8   : > { %v5217_v14 = vpop.eup %5216  ;;  %v5502_v15 = vsub.f32 %v881_v33, %v933_v8  ;;  %v5504_v16 = vsub.f32 %v886_v36, %v934_v9  ;;  %v957_v19 = vsel %vm597_vm1, %v947_v11, 0.0  ;;  %v960_v20 = vsel %vm597_vm1, %v948_v12, 0.0  ;;  %v4104_v36 = vld [vmem:[%s6273_s9 + $0x2] ss:$0 sm:$0xff]  ;;  %v1252_v9 = vld [vmem:[%s6269_s5 + $0x28] sm:$0xff]  ;;  %v1253_v12 = vld [vmem:[%s6269_s5 + $0x30] sm:$0xff] }
 0x2f9   : > { %v5219_v22 = vpop.eup %5218  ;;  %v923_v23 = vpop.xlane.xlu1 %922  ;;  %958 = vadd.xlane.f32.xlu1 %v957_v19  ;;  %961 = vadd.xlane.f32.xlu0 %v960_v20  ;;  %v748_v10 = vmul.f32 %v5217_v14, %v5449_v18  ;;  %v5533_v44 = vadd.f32 %v4104_v36, %v754_v31  ;;  %v1251_v8 = vld [vmem:[%s6269_s5 + $0x20] sm:$0xff]  ;;  %v5001_v14 = vpack.c.bf16 %v1254_v13, %v1253_v12  ;;  %v1248_v20 = vld [vmem:[%s6269_s5 + $0x8] sm:$0xff]  ;;  %v1516_v12 = vld [vmem:[%s6269_s5 + $0x58] sm:$0xff] }
 0x2fa   : > { %v926_v24 = vpop.xlane.xlu0 %925  ;;  %v935_v26 = vmul.f32 0.03125, %v923_v23  ;;  %v949_v28 = vmul.f32 %v5502_v15, %v5502_v15  ;;  %v950_v29 = vmul.f32 %v5504_v16, %v5504_v16  ;;  %v747_v30 = vmul.f32 %v5219_v22, %v5447_v17  ;;  %v1247_v19 = vld [vmem:[%s6269_s5] sm:$0xff]  ;;  %v1676_v23 = vld [vmem:[%s6268_s4 + $0x68] sm:$0xff] }
 0x2fb   : > { %v936_v27 = vmul.f32 0.03125, %v926_v24  ;;  %v756_v42 = vmul.f32 %v4103_v21, %v748_v10  ;;  %v4997_v11 = vpack.c.bf16 %v1252_v9, %v1251_v8  ;;  %v1675_v22 = vld [vmem:[%s6268_s4 + $0x60] sm:$0xff] }
 0x2fc   : > { %v5221_v32 = vpop.eup %5220  ;;  %v5518_v33 = vsub.f32 %v5466_v37, %v935_v26  ;;  %v963_v18 = vsel %vm597_vm1, %v949_v28, 0.0  ;;  %v966_v35 = vsel %vm597_vm1, %v950_v29, 0.0  ;;  %v755_v17 = vmul.f32 %v4103_v21, %v747_v30 }
 0x2fd   : > { %v5521_v34 = vsub.f32 %v5470_v40, %v936_v27  ;;  %964 = vadd.xlane.f32.xlu1 %v963_v18  ;;  %v929_v38 = vpop.xlane.xlu1 %928  ;;  %967 = vadd.xlane.f32.xlu0 %v966_v35  ;;  %v749_v39 = vmul.f32 %v5221_v32, %v5456_v25  ;;  %v5544_v50 = vadd.f32 %v4104_v36, %v756_v42 }
 0x2fe   : > { %v937_v37 = vmul.f32 0.03125, %v929_v38  ;;  %v951_v40 = vmul.f32 %v5518_v33, %v5518_v33  ;;  %v5535_v45 = vadd.f32 %v4104_v36, %v755_v17  ;;  %4998 = vmatprep.subr.bf16.mxu1 %v4997_v11  ;;  %v5021_v24 = vpack.c.bf16 %v1676_v23, %v1675_v22  ;;  %v1249_v38 = vld [vmem:[%s6269_s5 + $0x10] sm:$0xff]  ;;  %v1250_v17 = vld [vmem:[%s6269_s5 + $0x18] sm:$0xff] }
 0x2ff   : > { %v952_v43 = vmul.f32 %v5521_v34, %v5521_v34  ;;  %v757_v46 = vmul.f32 %v4103_v21, %v749_v39  ;;  %5000 = vmatpush3.bf16.msra.mxu1 %v4997_v11  ;;  %v5005_v21 = vpack.c.bf16 %v1248_v20, %v1247_v19  ;;  %v1515_v11 = vld [vmem:[%s6269_s5 + $0x50] sm:$0xff] }
 0x300   : > { %v5538_v47 = vsub.f32 %v5472_v41, %v937_v37  ;;  %v969_v48 = vsel %vm597_vm1, %v951_v40, 0.0  ;;  %v4989_v49 = vpack.c.bf16 %v5535_v45, %v5533_v44  ;;  %5002 = vmatprep.subr.bf16.mxu1 %v5001_v14  ;;  %v5017_v20 = vpack.c.bf16 %v1516_v12, %v1515_v11 }
 0x301   : > { %v972_v25 = vsel %vm597_vm1, %v952_v43, 0.0  ;;  %970 = vadd.xlane.f32.xlu1 %v969_v48  ;;  %v5546_v51 = vadd.f32 %v4104_v36, %v757_v46  ;;  %v5009_v43 = vpack.c.bf16 %v1250_v17, %v1249_v38  ;;  %v1513_v46 = vld [vmem:[%s6269_s5 + $0x40] sm:$0xff]  ;;  %v1514_v48 = vld [vmem:[%s6269_s5 + $0x48] sm:$0xff] }
 0x302   : > { %973 = vadd.xlane.f32.xlu0 %v972_v25  ;;  %v953_v41 = vmul.f32 %v5538_v47, %v5538_v47  ;;  %4990 = vmatprep.subr.bf16.mxu0 %v4989_v49  ;;  %v4115_v38 = vld [vmem:[%s6273_s9 + $0x5] ss:$0 sm:$0xff] }
 0x303   : > { %v4993_v52 = vpack.c.bf16 %v5546_v51, %v5544_v50  ;;  %4992 = vmatpush3.bf16.msra.mxu0 %v4989_v49  ;;  %5004 = vmatpush3.bf16.msra.mxu1 %v5001_v14 }
 0x304   : > { %v975_v53 = vsel %vm597_vm1, %v953_v41, 0.0  ;;  %5006 = vmatprep.subr.bf16.mxu1 %v5005_v21 }
 0x305   : > { %4994 = vmatprep.subr.bf16.mxu0 %v4993_v52  ;;  %976 = vadd.xlane.f32.xlu1 %v975_v53 }
 0x307   : > { %4996 = vmatpush3.bf16.msra.mxu0 %v4993_v52 }
 0x308   : > { %5022 = vmatprep.subr.bf16.mxu0 %v5021_v24 }
 0x30a   : > { %4598 = vmatmul.mubr.msk.f32.vlgmr.msra.gmra.mrb[12].mxu0 %vm597_vm1, %v1035_v54 }
 0x30b   : > { %4600 = vmatprep.mubr.msk.f32.mxu0 %vm597_vm1, %v1036_v55  ;;  %5024 = vmatpush3.bf16.msra.mxu0 %v5021_v24  ;;  %v5013_v55 = vpack.c.bf16 %v1514_v48, %v1513_v46 }
 0x30e   : > { %4601 = vmatmul.mubr.msk.f32.gmra.mrb[14].mxu0 %vm597_vm1, %v1037_v56 }
 0x30f   : > { %4603 = vmatprep.mubr.msk.f32.mxu0 %vm597_vm1, %v1038_v57 }
 0x312   : > { %4604 = vmatmul.mubr.msk.f32.gmra.mrb[16].mxu0 %vm597_vm1, %v1039_v58 }
 0x313   : > { %4606 = vmatprep.mubr.msk.f32.mxu0 %vm597_vm1, %v1040_v59 }
 0x316   : > { %4607 = vmatmul.mubr.msk.f32.gmra.mrb[18].mxu0 %vm597_vm1, %v1041_v61 }
 0x317   : > { %4609 = vmatprep.mubr.msk.f32.mxu0 %vm597_vm1, %v1042_v62 }
 0x31a   : > { %4610 = vmatmul.mubr.msk.f32.gmra.mrb[20].mxu0 %vm597_vm1, %v1043_v63 }
 0x31b   : > { %4612 = vmatprep.mubr.msk.f32.mxu0 %vm597_vm1, %v1044_v0 }
 0x31e   : > { %4613 = vmatmul.mubr.msk.f32.gmra.mrb[22].mxu0 %vm597_vm1, %v1045_v1 }
 0x31f   : > { %4615 = vmatprep.mubr.msk.f32.mxu0 %vm597_vm1, %v1046_v2 }
 0x322   : > { %4616 = vmatmul.mubr.msk.f32.gmra.mrb[24].mxu0 %vm597_vm1, %v1047_v5 }
 0x323   : > { %4618 = vmatprep.mubr.msk.f32.mxu0 %vm597_vm1, %v1048_v6 }
 0x326   : > { %4619 = vmatmul.mubr.msk.f32.gmra.mrb[26].mxu0 %vm597_vm1, %v1049_v7 }
 0x382   : > { %v956_v29 = vpop.xlane.xlu0 %955 }
 0x383   : > { %v978_v42 = vmul.f32 0.03125, %v956_v29 }
 0x385   : > { %v986_v52 = vadd.f32 1e-05, %v978_v42 }
 0x386   : > { %v959_v32 = vpop.xlane.xlu1 %958  ;;  %v962_v36 = vpop.xlane.xlu0 %961 }
 0x387   : > { %v979_v25 = vmul.f32 0.03125, %v959_v32  ;;  %v980_v53 = vmul.f32 0.03125, %v962_v36  ;;  %5222 = vrsqrt.f32 %v986_v52  ;;  %v1677_v52 = vld [vmem:[%s6268_s4 + $0x70] sm:$0xff] }
 0x389   : > { %v987_v57 = vadd.f32 1e-05, %v979_v25  ;;  %v988_v61 = vadd.f32 1e-05, %v980_v53  ;;  %v1678_v53 = vld [vmem:[%s6268_s4 + $0x78] sm:$0xff] }
 0x38a   : > { %v965_v37 = vpop.xlane.xlu1 %964  ;;  %v968_v49 = vpop.xlane.xlu0 %967 }
 0x38b   : > { %v981_v58 = vmul.f32 0.03125, %v965_v37  ;;  %v982_v62 = vmul.f32 0.03125, %v968_v49  ;;  %5224 = vrsqrt.f32 %v987_v57 }
 0x38c   : > { %5226 = vrsqrt.f32 %v988_v61 }
 0x38d   : > { %v989_v1 = vadd.f32 1e-05, %v981_v58  ;;  %v990_v6 = vadd.f32 1e-05, %v982_v62 }
 0x38e   : > { %v971_v56 = vpop.xlane.xlu1 %970 }
 0x38f   : > { %v974_v0 = vpop.xlane.xlu0 %973  ;;  %v983_v2 = vmul.f32 0.03125, %v971_v56  ;;  %5228 = vrsqrt.f32 %v989_v1 }
 0x390   : > { %v984_v7 = vmul.f32 0.03125, %v974_v0  ;;  %5230 = vrsqrt.f32 %v990_v6 }
 0x391   : > { %v991_v13 = vadd.f32 1e-05, %v983_v2 }
 0x392   : > { %v977_v8 = vpop.xlane.xlu1 %976  ;;  %v992_v19 = vadd.f32 1e-05, %v984_v7 }
 0x393   : > { %v985_v14 = vmul.f32 0.03125, %v977_v8  ;;  %5232 = vrsqrt.f32 %v991_v13 }
 0x394   : > { %5234 = vrsqrt.f32 %v992_v19 }
 0x395   : > { %v993_v22 = vadd.f32 1e-05, %v985_v14 }
 0x397   : > { %5236 = vrsqrt.f32 %v993_v22 }
 0x3dd   : > { %v5607_v10 = vpop.f32.mrb[12].mxu0 }
 0x3de   : > { %v1168_v26 = vpop.f32.mrb[13].mxu0 }
 0x3e1   : > { %v5609_v27 = vpop.f32.mrb[14].mxu0 }
 0x3e2   : > { %v5611_v28 = vpop.f32.mrb[15].mxu0 }
 0x3e5   : > { %v5613_v30 = vpop.f32.mrb[16].mxu0 }
 0x3e6   : > { %v5615_v31 = vpop.f32.mrb[17].mxu0 }
 0x3e9   : > { %v5617_v18 = vpop.f32.mrb[18].mxu0 }
 0x3ea   : > { %v5619_v35 = vpop.f32.mrb[19].mxu0 }
 0x3ed   : > { %v4611_v39 = vpop.f32.mrb[20].mxu0 }
 0x3ee   : > { %v1208_v40 = vpop.f32.mrb[21].mxu0 }
 0x3ef   : > { %4629 = vmatprep.mubr.msk.f32.mxu1 %vm597_vm1, %v1208_v40 }
 0x3f0   : > { %4630 = vmatmul.mubr.msk.f32.vlgmr.msra.gmra.mrb[12].mxu1 %vm597_vm1, %v4611_v39 }
 0x3f1   : > { %v4614_v41 = vpop.f32.mrb[22].mxu0  ;;  %5008 = vmatpush3.bf16.msra.mxu1 %v5005_v21  ;;  %v5223_v21 = vpop.eup %5222 }
 0x3f2   : > { %v1218_v54 = vpop.f32.mrb[23].mxu0  ;;  %5010 = vmatprep.subr.bf16.mxu1 %v5009_v43  ;;  %v5225_v23 = vpop.eup %5224  ;;  %v1002_v24 = vmul.f32 %v5223_v21, %v5488_v60 }
 0x3f3   : > { %4632 = vmatprep.mubr.msk.f32.mxu1 %vm597_vm1, %v1218_v54  ;;  %v5227_v29 = vpop.eup %5226  ;;  %v5025_v54 = vpack.c.bf16 %v1678_v53, %v1677_v52 }
 0x3f4   : > { %4633 = vmatmul.mubr.msk.f32.gmra.mrb[14].mxu1 %vm597_vm1, %v4614_v41  ;;  %v1004_v36 = vmul.f32 %v5227_v29, %v5494_v4 }
 0x3f5   : > { %v4617_v59 = vpop.f32.mrb[24].mxu0  ;;  %5012 = vmatpush3.bf16.msra.mxu1 %v5009_v43  ;;  %5026 = vmatprep.subr.bf16.mxu0 %v5025_v54 }
 0x3f6   : > { %v1228_v63 = vpop.f32.mrb[25].mxu0  ;;  %5014 = vmatprep.subr.bf16.mxu1 %v5013_v55  ;;  %5028 = vmatpush3.bf16.msra.mxu0 %v5025_v54 }
 0x3f7   : > { %4635 = vmatprep.mubr.msk.f32.mxu1 %vm597_vm1, %v1228_v63 }
 0x3f8   : > { %4636 = vmatmul.mubr.msk.f32.gmra.mrb[16].mxu1 %vm597_vm1, %v4617_v59 }
 0x3f9   : > { %v4620_v5 = vpop.f32.mrb[26].mxu0 }
 0x3fa   : > { %v1238_v9 = vpop.f32.mrb[27].mxu0 }
 0x3fb   : > { %4638 = vmatprep.mubr.msk.f32.mxu1 %vm597_vm1, %v1238_v9 }
 0x3fc   : > { %4639 = vmatmul.mubr.msk.f32.gmra.mrb[18].mxu1 %vm597_vm1, %v4620_v5 }
 0x3fd   : > { %4649 = vmatprep.mubr.msk.f32.mxu1 %vm597_vm1, %v1168_v26  ;;  %v4114_v26 = vld [vmem:[%s6273_s9 + $0x4] ss:$0 sm:$0xff] }
 0x3fe   : > { %v1014_v32 = vmul.f32 %v4114_v26, %v1002_v24  ;;  %v1016_v39 = vmul.f32 %v4114_v26, %v1004_v36  ;;  %v4157_v24 = vld [vmem:[%s6273_s9 + $0x8] ss:$0 sm:$0xff] }
 0x400   : > { %4650 = vmatmul.mubr.msk.f32.vlgmr.msra.gmra.mrb[12].mxu1 %vm597_vm1, %v5607_v10  ;;  %v1003_v10 = vmul.f32 %v5225_v23, %v5492_v3  ;;  %v5670_v3 = vadd.f32 %v4115_v38, %v1014_v32 }
 0x401   : > { %4652 = vmatprep.mubr.msk.f32.mxu1 %vm597_vm1, %v5611_v28  ;;  %5016 = vmatpush3.bf16.msra.mxu1 %v5013_v55  ;;  %v5229_v28 = vpop.eup %5228  ;;  %v4156_v55 = vld [vmem:[%s6273_s9 + $0x7] ss:$0 sm:$0xff] }
 0x402   : > { %5018 = vmatprep.subr.bf16.mxu1 %v5017_v20  ;;  %v5231_v60 = vpop.eup %5230 }
 0x403   : > { %v5233_v17 = vpop.eup %5232  ;;  %v1006_v4 = vmul.f32 %v5231_v60, %v5504_v16 }
 0x404   : > { %4653 = vmatmul.mubr.msk.f32.gmra.mrb[14].mxu1 %vm597_vm1, %v5609_v27  ;;  %v1015_v27 = vmul.f32 %v4114_v26, %v1003_v10  ;;  %v5235_v42 = vpop.eup %5234 }
 0x405   : > { %4655 = vmatprep.mubr.msk.f32.mxu1 %vm597_vm1, %v5615_v31  ;;  %5020 = vmatpush3.bf16.msra.mxu1 %v5017_v20  ;;  %v1005_v31 = vmul.f32 %v5229_v28, %v5502_v15  ;;  %v5237_v40 = vpop.eup %5236  ;;  %v5680_v15 = vadd.f32 %v4115_v38, %v1016_v39  ;;  %v1018_v43 = vmul.f32 %v4114_v26, %v1006_v4 }
 0x406   : > { %v1008_v46 = vmul.f32 %v5235_v42, %v5521_v34  ;;  %v1009_v48 = vmul.f32 %v5237_v40, %v5538_v47 }
 0x407   : > { %v1017_v37 = vmul.f32 %v4114_v26, %v1005_v31  ;;  %v5690_v25 = vadd.f32 %v4115_v38, %v1018_v43 }
 0x408   : > { %4656 = vmatmul.mubr.msk.f32.gmra.mrb[16].mxu1 %vm597_vm1, %v5613_v30  ;;  %v5677_v30 = vadd.f32 %v4115_v38, %v1015_v27  ;;  %v1021_v49 = vmul.f32 %v4114_v26, %v1009_v48 }
 0x409   : > { %4658 = vmatprep.mubr.msk.f32.mxu1 %vm597_vm1, %v5619_v35  ;;  %v1007_v35 = vmul.f32 %v5233_v17, %v5518_v33  ;;  %v5687_v16 = vadd.f32 %v4115_v38, %v1017_v37  ;;  %v1020_v33 = vmul.f32 %v4114_v26, %v1008_v46 }
 0x40a   : > { %v5704_v47 = vadd.f32 %v4115_v38, %v1021_v49 }
 0x40b   : > { %v5698_v41 = vadd.f32 %v4115_v38, %v1020_v33 }
 0x40c   : > { %4659 = vmatmul.mubr.msk.f32.gmra.mrb[18].mxu1 %vm597_vm1, %v5617_v18  ;;  %v1019_v18 = vmul.f32 %v4114_v26, %v1007_v35 }
 0x40d   : > { %4669 = vmatprep.mubr.msk.f32.mxu1 %vm597_vm1, %v5670_v3 }
 0x40e   : > { %v5696_v34 = vadd.f32 %v4115_v38, %v1019_v18 }
 0x410   : > { %4670 = vmatmul.mubr.msk.f32.vlgmr.msra.gmra.mrb[12].mxu1 %vm597_vm1, %v5677_v30 }
 0x411   : > { %4672 = vmatprep.mubr.msk.f32.mxu1 %vm597_vm1, %v5680_v15 }
 0x414   : > { %4673 = vmatmul.mubr.msk.f32.gmra.mrb[14].mxu1 %vm597_vm1, %v5687_v16 }
 0x415   : > { %4675 = vmatprep.mubr.msk.f32.mxu1 %vm597_vm1, %v5690_v25 }
 0x418   : > { %4676 = vmatmul.mubr.msk.f32.gmra.mrb[16].mxu1 %vm597_vm1, %v5696_v34 }
 0x419   : > { %4678 = vmatprep.mubr.msk.f32.mxu1 %vm597_vm1, %v5698_v41 }
 0x41c   : > { %4679 = vmatmul.mubr.msk.f32.gmra.mrb[18].mxu1 %vm597_vm1, %v5704_v47 }
 0x4e3   : > { %v4671_v56 = vpop.f32.mrb[12].mxu1 }
 0x4e4   : > { %v1660_v57 = vadd.f32 %v4671_v56, %v4156_v55  ;;  %v1607_v58 = vpop.f32.mrb[13].mxu1 }
 0x4e5   : > { %v1659_v59 = vadd.f32 %v4156_v55, %v1607_v58 }
 0x4e6   : > { %v1668_v63 = vmax.f32 %v1660_v57, 0.0 }
 0x4e7   : > { %v1667_v61 = vmax.f32 %v1659_v59, 0.0  ;;  %v4674_v62 = vpop.f32.mrb[14].mxu1 }
 0x4e8   : > { %v1662_v0 = vadd.f32 %v4674_v62, %v4156_v55  ;;  %v1617_v1 = vpop.f32.mrb[15].mxu1 }
 0x4e9   : > { %v1661_v2 = vadd.f32 %v4156_v55, %v1617_v1  ;;  %4689 = vmatprep.mubr.msk.f32.mxu0 %vm597_vm1, %v1667_v61 }
 0x4ea   : > { %4690 = vmatmul.mubr.msk.f32.vlgmr.msra.gmra.mrb[28].mxu0 %vm597_vm1, %v1668_v63  ;;  %v1670_v7 = vmax.f32 %v1662_v0, 0.0 }
 0x4eb   : > { %v1669_v5 = vmax.f32 %v1661_v2, 0.0  ;;  %v4677_v6 = vpop.f32.mrb[16].mxu1 }
 0x4ec   : > { %v1664_v8 = vadd.f32 %v4677_v6, %v4156_v55  ;;  %v1627_v9 = vpop.f32.mrb[17].mxu1 }
 0x4ed   : > { %v1663_v11 = vadd.f32 %v4156_v55, %v1627_v9  ;;  %4692 = vmatprep.mubr.msk.f32.mxu0 %vm597_vm1, %v1669_v5 }
 0x4ee   : > { %4693 = vmatmul.mubr.msk.f32.gmra.mrb[30].mxu0 %vm597_vm1, %v1670_v7  ;;  %v1672_v14 = vmax.f32 %v1664_v8, 0.0 }
 0x4ef   : > { %v1671_v12 = vmax.f32 %v1663_v11, 0.0  ;;  %v4680_v13 = vpop.f32.mrb[18].mxu1 }
 0x4f0   : > { %v1666_v19 = vadd.f32 %v4680_v13, %v4156_v55  ;;  %v1637_v20 = vpop.f32.mrb[19].mxu1 }
 0x4f1   : > { %v1665_v21 = vadd.f32 %v4156_v55, %v1637_v20  ;;  %4695 = vmatprep.mubr.msk.f32.mxu0 %vm597_vm1, %v1671_v12 }
 0x4f2   : > { %4696 = vmatmul.mubr.msk.f32.gmra.mrb[32].mxu0 %vm597_vm1, %v1672_v14  ;;  %v1674_v23 = vmax.f32 %v1666_v19, 0.0 }
 0x4f3   : > { %v1673_v22 = vmax.f32 %v1665_v21, 0.0 }
 0x4f5   : > { %4698 = vmatprep.mubr.msk.f32.mxu0 %vm597_vm1, %v1673_v22 }
 0x4f6   : > { %4699 = vmatmul.mubr.msk.f32.gmra.mrb[34].mxu0 %vm597_vm1, %v1674_v23 }
 0x5bd   : > { %v4691_v29 = vpop.f32.mrb[28].mxu0 }
 0x5be   : > { %v1780_v26 = vadd.f32 %v4691_v29, %v4157_v24  ;;  %v1774_v10 = vpop.f32.mrb[29].mxu0 }
 0x5bf   : > { %v1775_v28 = vadd.f32 %v4157_v24, %v1774_v10 }
 0x5c0   : > { %v1818_v32 = vsel %vm597_vm1, %v1780_v26, 0.0 }
 0x5c1   : > { %1819 = vadd.xlane.f32.xlu1 %v1818_v32  ;;  %v4694_v36 = vpop.f32.mrb[30].mxu0  ;;  %v1815_v60 = vsel %vm597_vm1, %v1775_v28, 0.0 }
 0x5c2   : > { %v1790_v38 = vadd.f32 %v4694_v36, %v4157_v24  ;;  %1816 = vadd.xlane.f32.xlu0 %v1815_v60  ;;  %v1784_v27 = vpop.f32.mrb[31].mxu0 }
 0x5c3   : > { %v1785_v31 = vadd.f32 %v4157_v24, %v1784_v27 }
 0x5c4   : > { %v1824_v17 = vsel %vm597_vm1, %v1790_v38, 0.0 }
 0x5c5   : > { %1825 = vadd.xlane.f32.xlu1 %v1824_v17  ;;  %v4697_v39 = vpop.f32.mrb[32].mxu0  ;;  %v1821_v4 = vsel %vm597_vm1, %v1785_v31, 0.0 }
 0x5c6   : > { %v1800_v42 = vadd.f32 %v4697_v39, %v4157_v24  ;;  %1822 = vadd.xlane.f32.xlu0 %v1821_v4  ;;  %v1794_v37 = vpop.f32.mrb[33].mxu0  ;;  %v5785_v4 = vld [vmem:[%s5782_s24] sm:$0xff] }
 0x5c7   : > { %v1795_v35 = vadd.f32 %v4157_v24, %v1794_v37  ;;  %4717 = vmatprep.mubr.msk.f32.mxu0 %vm1951_vm2, %v5785_v4  ;;  %v2054_v37 = vld [vmem:[%s6270_s6 + $0x28] sm:$0xff] }
 0x5c8   : > { %v1830_v40 = vsel %vm597_vm1, %v1800_v42, 0.0 }
 0x5c9   : > { %1831 = vadd.xlane.f32.xlu1 %v1830_v40  ;;  %v4700_v43 = vpop.f32.mrb[34].mxu0  ;;  %v1827_v46 = vsel %vm597_vm1, %v1795_v35, 0.0 }
 0x5ca   : > { %v1810_v18 = vadd.f32 %v4700_v43, %v4157_v24  ;;  %1828 = vadd.xlane.f32.xlu0 %v1827_v46  ;;  %v1804_v48 = vpop.f32.mrb[35].mxu0  ;;  %v2056_v43 = vld [vmem:[%s6270_s6 + $0x38] sm:$0xff] }
 0x5cb   : > { %v1805_v33 = vadd.f32 %v4157_v24, %v1804_v48 }
 0x5cc   : > { %v1836_v49 = vsel %vm597_vm1, %v1810_v18, 0.0 }
 0x5cd   : > { %1837 = vadd.xlane.f32.xlu1 %v1836_v49  ;;  %v1833_v52 = vsel %vm597_vm1, %v1805_v33, 0.0 }
 0x5ce   : > { %1834 = vadd.xlane.f32.xlu0 %v1833_v52 }
 0x64e   : > { %v1820_v53 = vpop.xlane.xlu1 %1819 }
 0x64f   : > { %v1840_v54 = vmul.f32 0.03125, %v1820_v53  ;;  %v1817_v55 = vpop.xlane.xlu0 %1816 }
 0x650   : > { %v1839_v56 = vmul.f32 0.03125, %v1817_v55 }
 0x651   : > { %v5736_v57 = vsub.f32 %v1780_v26, %v1840_v54 }
 0x652   : > { %v5738_v58 = vsub.f32 %v1775_v28, %v1839_v56  ;;  %v1826_v59 = vpop.xlane.xlu1 %1825 }
 0x653   : > { %v1842_v61 = vmul.f32 0.03125, %v1826_v59  ;;  %v1823_v62 = vpop.xlane.xlu0 %1822  ;;  %v1856_v63 = vmul.f32 %v5736_v57, %v5736_v57 }
 0x654   : > { %v1841_v0 = vmul.f32 0.03125, %v1823_v62  ;;  %v1855_v1 = vmul.f32 %v5738_v58, %v5738_v58 }
 0x655   : > { %v5744_v2 = vsub.f32 %v1790_v38, %v1842_v61  ;;  %v1866_v5 = vsel %vm597_vm1, %v1856_v63, 0.0 }
 0x656   : > { %v5747_v6 = vsub.f32 %v1785_v31, %v1841_v0  ;;  %v1832_v7 = vpop.xlane.xlu1 %1831  ;;  %1867 = vadd.xlane.f32.xlu1 %v1866_v5  ;;  %v1863_v8 = vsel %vm597_vm1, %v1855_v1, 0.0 }
 0x657   : > { %v1844_v9 = vmul.f32 0.03125, %v1832_v7  ;;  %1864 = vadd.xlane.f32.xlu0 %v1863_v8  ;;  %v1829_v11 = vpop.xlane.xlu0 %1828  ;;  %v1858_v12 = vmul.f32 %v5744_v2, %v5744_v2 }
 0x658   : > { %v1843_v13 = vmul.f32 0.03125, %v1829_v11  ;;  %v1857_v14 = vmul.f32 %v5747_v6, %v5747_v6 }
 0x659   : > { %v5754_v19 = vsub.f32 %v1800_v42, %v1844_v9  ;;  %v1872_v20 = vsel %vm597_vm1, %v1858_v12, 0.0  ;;  %v2053_v42 = vld [vmem:[%s6270_s6 + $0x20] sm:$0xff] }
 0x65a   : > { %v5757_v21 = vsub.f32 %v1795_v35, %v1843_v13  ;;  %1873 = vadd.xlane.f32.xlu1 %v1872_v20  ;;  %v1838_v22 = vpop.xlane.xlu1 %1837  ;;  %v1869_v23 = vsel %vm597_vm1, %v1857_v14, 0.0  ;;  %v2055_v35 = vld [vmem:[%s6270_s6 + $0x30] sm:$0xff]  ;;  %v5045_v40 = vpack.c.bf16 %v2054_v37, %v2053_v42 }
 0x65b   : > { %v1846_v24 = vmul.f32 0.03125, %v1838_v22  ;;  %1870 = vadd.xlane.f32.xlu0 %v1869_v23  ;;  %v1835_v29 = vpop.xlane.xlu0 %1834  ;;  %v1860_v26 = vmul.f32 %v5754_v19, %v5754_v19  ;;  %v5049_v46 = vpack.c.bf16 %v2056_v43, %v2055_v35  ;;  %v4166_v22 = vld [vmem:[%s6273_s9 + $0x9] ss:$0 sm:$0xff] }
 0x65c   : > { %v1845_v10 = vmul.f32 0.03125, %v1835_v29  ;;  %v1859_v28 = vmul.f32 %v5757_v21, %v5757_v21  ;;  %5046 = vmatprep.subr.bf16.mxu1 %v5045_v40 }
 0x65d   : > { %v5764_v32 = vsub.f32 %v1810_v18, %v1846_v24  ;;  %v1878_v36 = vsel %vm597_vm1, %v1860_v26, 0.0  ;;  %5048 = vmatpush3.bf16.msra.mxu1 %v5045_v40 }
 0x65e   : > { %v5767_v60 = vsub.f32 %v1805_v33, %v1845_v10  ;;  %1879 = vadd.xlane.f32.xlu1 %v1878_v36  ;;  %v1875_v38 = vsel %vm597_vm1, %v1859_v28, 0.0  ;;  %5050 = vmatprep.subr.bf16.mxu1 %v5049_v46  ;;  %v4167_v10 = vld [vmem:[%s6273_s9 + $0xa] ss:$0 sm:$0xff] }
 0x65f   : > { %1876 = vadd.xlane.f32.xlu0 %v1875_v38  ;;  %v1862_v27 = vmul.f32 %v5764_v32, %v5764_v32 }
 0x660   : > { %v1861_v31 = vmul.f32 %v5767_v60, %v5767_v60 }
 0x661   : > { %v1884_v17 = vsel %vm597_vm1, %v1862_v27, 0.0  ;;  %5052 = vmatpush3.bf16.msra.mxu1 %v5049_v46 }
 0x662   : > { %1885 = vadd.xlane.f32.xlu1 %v1884_v17  ;;  %v1881_v39 = vsel %vm597_vm1, %v1861_v31, 0.0 }
 0x663   : > { %1882 = vadd.xlane.f32.xlu0 %v1881_v39 }
 0x6e3   : > { %v1868_v18 = vpop.xlane.xlu1 %1867 }
 0x6e4   : > { %v1888_v48 = vmul.f32 0.03125, %v1868_v18  ;;  %v1865_v33 = vpop.xlane.xlu0 %1864 }
 0x6e5   : > { %v1887_v49 = vmul.f32 0.03125, %v1865_v33 }
 0x6e6   : > { %v1896_v52 = vadd.f32 1e-05, %v1888_v48 }
 0x6e7   : > { %v1895_v53 = vadd.f32 1e-05, %v1887_v49  ;;  %v1874_v54 = vpop.xlane.xlu1 %1873 }
 0x6e8   : > { %5238 = vrsqrt.f32 %v1896_v52  ;;  %v1890_v55 = vmul.f32 0.03125, %v1874_v54  ;;  %v1871_v56 = vpop.xlane.xlu0 %1870 }
 0x6e9   : > { %5240 = vrsqrt.f32 %v1895_v53  ;;  %v1889_v59 = vmul.f32 0.03125, %v1871_v56 }
 0x6ea   : > { %v1898_v61 = vadd.f32 1e-05, %v1890_v55 }
 0x6eb   : > { %v1897_v62 = vadd.f32 1e-05, %v1889_v59  ;;  %v1880_v63 = vpop.xlane.xlu1 %1879 }
 0x6ec   : > { %5242 = vrsqrt.f32 %v1898_v61  ;;  %v1892_v0 = vmul.f32 0.03125, %v1880_v63  ;;  %v1877_v1 = vpop.xlane.xlu0 %1876 }
 0x6ed   : > { %5244 = vrsqrt.f32 %v1897_v62  ;;  %v1891_v5 = vmul.f32 0.03125, %v1877_v1  ;;  %v5851_v1 = vld [vmem:[%s5782_s24 + $0x10] sm:$0xff] }
 0x6ee   : > { %v1900_v7 = vadd.f32 1e-05, %v1892_v0  ;;  %v5848_v0 = vld [vmem:[%s5782_s24 + $0x8] sm:$0xff] }
 0x6ef   : > { %v1899_v8 = vadd.f32 1e-05, %v1891_v5  ;;  %v1886_v9 = vpop.xlane.xlu1 %1885  ;;  %v2050_v5 = vld [vmem:[%s6270_s6 + $0x8] sm:$0xff] }
 0x6f0   : > { %5246 = vrsqrt.f32 %v1900_v7  ;;  %v1894_v11 = vmul.f32 0.03125, %v1886_v9  ;;  %v1883_v12 = vpop.xlane.xlu0 %1882  ;;  %v2265_v9 = vld [vmem:[%s6268_s4 + $0x88] sm:$0xff] }
 0x6f1   : > { %5248 = vrsqrt.f32 %v1899_v8  ;;  %v1893_v13 = vmul.f32 0.03125, %v1883_v12  ;;  %v2264_v8 = vld [vmem:[%s6268_s4 + $0x80] sm:$0xff]  ;;  %v2051_v12 = vld [vmem:[%s6270_s6 + $0x10] sm:$0xff] }
 0x6f2   : > { %v5239_v14 = vpop.eup %5238  ;;  %v1902_v20 = vadd.f32 1e-05, %v1894_v11  ;;  %v5061_v11 = vpack.c.bf16 %v2265_v9, %v2264_v8 }
 0x6f3   : > { %v5241_v23 = vpop.eup %5240  ;;  %v1912_v24 = vmul.f32 %v5239_v14, %v5736_v57  ;;  %v1901_v29 = vadd.f32 1e-05, %v1893_v13  ;;  %v2052_v13 = vld [vmem:[%s6270_s6 + $0x18] sm:$0xff] }
 0x6f4   : > { %v1911_v26 = vmul.f32 %v5241_v23, %v5738_v58  ;;  %5250 = vrsqrt.f32 %v1902_v20 }
 0x6f5   : > { %5252 = vrsqrt.f32 %v1901_v29  ;;  %v1924_v28 = vmul.f32 %v4166_v22, %v1912_v24  ;;  %v2266_v29 = vld [vmem:[%s6268_s4 + $0x90] sm:$0xff] }
 0x6f6   : > { %v5243_v36 = vpop.eup %5242  ;;  %v1923_v38 = vmul.f32 %v4166_v22, %v1911_v26  ;;  %v2267_v26 = vld [vmem:[%s6268_s4 + $0x98] sm:$0xff] }
 0x6f7   : > { %v5245_v27 = vpop.eup %5244  ;;  %v1914_v31 = vmul.f32 %v5243_v36, %v5744_v2  ;;  %v1936_v17 = vadd.f32 %v4167_v10, %v1924_v28  ;;  %v4180_v28 = vld [vmem:[%s6273_s9 + $0xb] ss:$0 sm:$0xff] }
 0x6f8   : > { %v1913_v39 = vmul.f32 %v5245_v27, %v5747_v6  ;;  %v1935_v42 = vadd.f32 %v4167_v10, %v1923_v38 }
 0x6f9   : > { %v5812_v57 = vadd.f32 %v1936_v17, %v5677_v30  ;;  %v1926_v58 = vmul.f32 %v4166_v22, %v1914_v31 }
 0x6fa   : > { %v5247_v37 = vpop.eup %5246  ;;  %v5815_v35 = vadd.f32 %v1935_v42, %v5670_v3  ;;  %v1925_v40 = vmul.f32 %v4166_v22, %v1913_v39 }
 0x6fb   : > { %v5249_v43 = vpop.eup %5248  ;;  %v1916_v46 = vmul.f32 %v5247_v37, %v5754_v19  ;;  %v1938_v18 = vadd.f32 %v4167_v10, %v1926_v58 }
 0x6fc   : > { %v1915_v48 = vmul.f32 %v5249_v43, %v5757_v21  ;;  %v5029_v2 = vpack.c.bf16 %v5812_v57, %v5815_v35  ;;  %v1937_v6 = vadd.f32 %v4167_v10, %v1925_v40 }
 0x6fd   : > { %v5822_v33 = vadd.f32 %v1938_v18, %v5687_v16  ;;  %v1928_v30 = vmul.f32 %v4166_v22, %v1916_v46  ;;  %v5286_v18 = vld [vmem:[%s5484_s28] sm:$0xff] }
 0x6fe   : > { %v5251_v49 = vpop.eup %5250  ;;  %5030 = vmatprep.subr.bf16.mxu0 %v5029_v2  ;;  %v5825_v3 = vadd.f32 %v1937_v6, %v5680_v15  ;;  %v1927_v52 = vmul.f32 %v4166_v22, %v1915_v48  ;;  %v4181_v48 = vld [vmem:[%s6273_s9 + $0xc] ss:$0 sm:$0xff] }
 0x6ff   : > { %v5253_v53 = vpop.eup %5252  ;;  %v1918_v19 = vmul.f32 %v5251_v49, %v5764_v32  ;;  %5032 = vmatpush3.bf16.msra.mxu0 %v5029_v2  ;;  %v1940_v54 = vadd.f32 %v4167_v10, %v1928_v30 }
 0x700   : > { %v1917_v21 = vmul.f32 %v5253_v53, %v5767_v60  ;;  %v5033_v55 = vpack.c.bf16 %v5822_v33, %v5825_v3  ;;  %v1939_v56 = vadd.f32 %v4167_v10, %v1927_v52 }
 0x701   : > { %v5832_v16 = vadd.f32 %v1940_v54, %v5696_v34  ;;  %v1930_v59 = vmul.f32 %v4166_v22, %v1918_v19 }
 0x702   : > { %5034 = vmatprep.subr.bf16.mxu0 %v5033_v55  ;;  %v5835_v15 = vadd.f32 %v1939_v56, %v5690_v25  ;;  %v1929_v61 = vmul.f32 %v4166_v22, %v1917_v21  ;;  %v5057_v22 = vpack.c.bf16 %v2052_v13, %v2051_v12 }
 0x703   : > { %5036 = vmatpush3.bf16.msra.mxu0 %v5033_v55  ;;  %v1942_v32 = vadd.f32 %v4167_v10, %v1930_v59 }
 0x704   : > { %v5037_v60 = vpack.c.bf16 %v5832_v16, %v5835_v15  ;;  %v1941_v62 = vadd.f32 %v4167_v10, %v1929_v61  ;;  %v5065_v10 = vpack.c.bf16 %v2267_v26, %v2266_v29 }
 0x705   : > { %v5840_v63 = vadd.f32 %v1942_v32, %v5704_v47  ;;  %v5858_v47 = vld [vmem:[%s5782_s24 + $0x18] sm:$0xff] }
 0x706   : > { %5038 = vmatprep.subr.bf16.mxu0 %v5037_v60  ;;  %v5843_v34 = vadd.f32 %v1941_v62, %v5698_v41  ;;  %v2049_v41 = vld [vmem:[%s6270_s6] sm:$0xff] }
 0x707   : > { %5040 = vmatpush3.bf16.msra.mxu0 %v5037_v60  ;;  %v5053_v7 = vpack.c.bf16 %v2050_v5, %v2049_v41 }
 0x708   : > { %v5041_v25 = vpack.c.bf16 %v5840_v63, %v5843_v34 }
 0x709   : > { %5054 = vmatprep.subr.bf16.mxu1 %v5053_v7 }
 0x70a   : > { %5042 = vmatprep.subr.bf16.mxu0 %v5041_v25 }
 0x70b   : > { %5044 = vmatpush3.bf16.msra.mxu0 %v5041_v25 }
 0x70c   : > { %5062 = vmatprep.subr.bf16.mxu0 %v5061_v11 }
 0x70e   : > { %4718 = vmatmul.mubr.msk.f32.vlgmr.msra.gmra.mrb[36].mxu0 %vm1951_vm2, %v5848_v0 }
 0x70f   : > { %4720 = vmatprep.mubr.msk.f32.mxu0 %vm1951_vm2, %v5851_v1  ;;  %5064 = vmatpush3.bf16.msra.mxu0 %v5061_v11 }
 0x710   : > { %5066 = vmatprep.subr.bf16.mxu0 %v5065_v10 }
 0x712   : > { %4721 = vmatmul.mubr.msk.f32.gmra.mrb[38].mxu0 %vm1951_vm2, %v5858_v47 }
 0x713   : > { %5068 = vmatpush3.bf16.msra.mxu0 %v5065_v10 }
 0x7e1   : > { %v4719_v14 = vpop.f32.mrb[36].mxu0 }
 0x7e2   : > { %v2030_v20 = vpop.f32.mrb[37].mxu0 }
 0x7e3   : > { %4731 = vmatprep.mubr.msk.f32.mxu1 %vm597_vm1, %v2030_v20 }
 0x7e4   : > { %4732 = vmatmul.mubr.msk.f32.vlgmr.msra.gmra.mrb[20].mxu1 %vm597_vm1, %v4719_v14 }
 0x7e5   : > { %v4722_v23 = vpop.f32.mrb[38].mxu0  ;;  %5056 = vmatpush3.bf16.msra.mxu1 %v5053_v7 }
 0x7e6   : > { %v2040_v24 = vpop.f32.mrb[39].mxu0  ;;  %5058 = vmatprep.subr.bf16.mxu1 %v5057_v22 }
 0x7e7   : > { %4734 = vmatprep.mubr.msk.f32.mxu1 %vm597_vm1, %v2040_v24 }
 0x7e8   : > { %4735 = vmatmul.mubr.msk.f32.gmra.mrb[22].mxu1 %vm597_vm1, %v4722_v23 }
 0x7e9   : > { %5060 = vmatpush3.bf16.msra.mxu1 %v5057_v22  ;;  %4745 = vmatprep.mubr.msk.f32.mxu1 %vm597_vm1, %v5533_v44 }
 0x7ec   : > { %4746 = vmatmul.mubr.msk.f32.vlgmr.msra.gmra.mrb[20].mxu1 %vm597_vm1, %v5535_v45 }
 0x7ed   : > { %4748 = vmatprep.mubr.msk.f32.mxu1 %vm597_vm1, %v5544_v50 }
 0x7f0   : > { %4749 = vmatmul.mubr.msk.f32.gmra.mrb[22].mxu1 %vm597_vm1, %v5546_v51 }
 0x8bf   : > { %v4747_v36 = vpop.f32.mrb[20].mxu1 }
 0x8c0   : > { %v2257_v38 = vadd.f32 %v4747_v36, %v4180_v28  ;;  %v2232_v27 = vpop.f32.mrb[21].mxu1 }
 0x8c1   : > { %v2256_v31 = vadd.f32 %v4180_v28, %v2232_v27 }
 0x8c2   : > { %v2261_v42 = vmax.f32 %v2257_v38, 0.0 }
 0x8c3   : > { %v2260_v17 = vmax.f32 %v2256_v31, 0.0  ;;  %v4750_v39 = vpop.f32.mrb[22].mxu1 }
 0x8c4   : > { %v2259_v58 = vadd.f32 %v4750_v39, %v4180_v28  ;;  %v2242_v37 = vpop.f32.mrb[23].mxu1 }
 0x8c5   : > { %v2258_v40 = vadd.f32 %v4180_v28, %v2242_v37  ;;  %4759 = vmatprep.mubr.msk.f32.mxu0 %vm597_vm1, %v2260_v17 }
 0x8c6   : > { %4760 = vmatmul.mubr.msk.f32.vlgmr.msra.gmra.mrb[40].mxu0 %vm597_vm1, %v2261_v42  ;;  %v2263_v46 = vmax.f32 %v2259_v58, 0.0 }
 0x8c7   : > { %v2262_v43 = vmax.f32 %v2258_v40, 0.0 }
 0x8c9   : > { %4762 = vmatprep.mubr.msk.f32.mxu0 %vm597_vm1, %v2262_v43 }
 0x8ca   : > { %4763 = vmatmul.mubr.msk.f32.gmra.mrb[42].mxu0 %vm597_vm1, %v2263_v46  ;;  %v4186_v46 = vld [vmem:[%s6273_s9 + $0xd] ss:$0 sm:$0xff] }
 0x8cb   : > { %4773 = vmatprep.mubr.msk.f32.mxu0 %vm597_vm1, %v5286_v18 }
 0x999   : > { %v4761_v2 = vpop.f32.mrb[40].mxu0 }
 0x99a   : > { %v2357_v6 = vadd.f32 %v4761_v2, %v4181_v48  ;;  %v2351_v30 = vpop.f32.mrb[41].mxu0 }
 0x99b   : > { %v2352_v49 = vadd.f32 %v4181_v48, %v2351_v30 }
 0x99c   : > { %v2375_v52 = vsel %vm597_vm1, %v2357_v6, 0.0 }
 0x99d   : > { %2376 = vadd.xlane.f32.xlu1 %v2375_v52  ;;  %v4764_v53 = vpop.f32.mrb[42].mxu0  ;;  %v2372_v19 = vsel %vm597_vm1, %v2352_v49, 0.0 }
 0x99e   : > { %v2367_v54 = vadd.f32 %v4764_v53, %v4181_v48  ;;  %2373 = vadd.xlane.f32.xlu0 %v2372_v19  ;;  %v2361_v21 = vpop.f32.mrb[43].mxu0 }
 0x99f   : > { %v2362_v55 = vadd.f32 %v4181_v48, %v2361_v21 }
 0x9a0   : > { %v2381_v56 = vsel %vm597_vm1, %v2367_v54, 0.0 }
 0x9a1   : > { %2382 = vadd.xlane.f32.xlu1 %v2381_v56  ;;  %v2378_v59 = vsel %vm597_vm1, %v2362_v55, 0.0 }
 0x9a2   : > { %2379 = vadd.xlane.f32.xlu0 %v2378_v59 }
 0xa2a   : > { %v2377_v61 = vpop.xlane.xlu1 %2376 }
 0xa2b   : > { %v2385_v32 = vmul.f32 0.03125, %v2377_v61  ;;  %v2374_v60 = vpop.xlane.xlu0 %2373 }
 0xa2c   : > { %v2384_v62 = vmul.f32 0.03125, %v2374_v60 }
 0xa2d   : > { %v2389_v25 = vsub.f32 %v2357_v6, %v2385_v32  ;;  %v4187_v6 = vld [vmem:[%s6273_s9 + $0xe] ss:$0 sm:$0xff] }
 0xa2e   : > { %v2388_v41 = vsub.f32 %v2352_v49, %v2384_v62  ;;  %v2383_v5 = vpop.xlane.xlu1 %2382 }
 0xa2f   : > { %v2387_v7 = vmul.f32 0.03125, %v2383_v5  ;;  %v2380_v8 = vpop.xlane.xlu0 %2379  ;;  %v2393_v9 = vmul.f32 %v2389_v25, %v2389_v25  ;;  %v5287_v5 = vld [vmem:[%s5484_s28 + $0x8] sm:$0xff] }
 0xa30   : > { %v2386_v11 = vmul.f32 0.03125, %v2380_v8  ;;  %v2392_v12 = vmul.f32 %v2388_v41, %v2388_v41  ;;  %v5291_v8 = vld [vmem:[%s5484_s28 + $0x28] sm:$0xff] }
 0xa31   : > { %v2391_v13 = vsub.f32 %v2367_v54, %v2387_v7  ;;  %v2399_v14 = vsel %vm597_vm1, %v2393_v9, 0.0  ;;  %v5288_v7 = vld [vmem:[%s5484_s28 + $0x10] sm:$0xff] }
 0xa32   : > { %v2390_v20 = vsub.f32 %v2362_v55, %v2386_v11  ;;  %2400 = vadd.xlane.f32.xlu1 %v2399_v14  ;;  %v2396_v22 = vsel %vm597_vm1, %v2392_v12, 0.0  ;;  %v5292_v9 = vld [vmem:[%s5484_s28 + $0x30] sm:$0xff]  ;;  %v5293_v11 = vld [vmem:[%s5484_s28 + $0x38] sm:$0xff]  ;;  %v5294_v12 = vld [vmem:[%s5484_s28 + $0x40] sm:$0xff] }
 0xa33   : > { %2397 = vadd.xlane.f32.xlu0 %v2396_v22  ;;  %v2395_v23 = vmul.f32 %v2391_v13, %v2391_v13  ;;  %v5296_v14 = vld [vmem:[%s5484_s28 + $0x50] sm:$0xff]  ;;  %v5298_v22 = vld [vmem:[%s5484_s28 + $0x60] sm:$0xff] }
 0xa34   : > { %v2394_v24 = vmul.f32 %v2390_v20, %v2390_v20 }
 0xa35   : > { %v2405_v29 = vsel %vm597_vm1, %v2395_v23, 0.0  ;;  %v5299_v23 = vld [vmem:[%s5484_s28 + $0x68] sm:$0xff] }
 0xa36   : > { %2406 = vadd.xlane.f32.xlu1 %v2405_v29  ;;  %v2402_v26 = vsel %vm597_vm1, %v2394_v24, 0.0  ;;  %v5300_v24 = vld [vmem:[%s5484_s28 + $0x70] sm:$0xff]  ;;  %v5301_v29 = vld [vmem:[%s5484_s28 + $0x78] sm:$0xff] }
 0xa37   : > { %2403 = vadd.xlane.f32.xlu0 %v2402_v26  ;;  %v2593_v26 = vld [vmem:[%s6269_s5 + $0x80] sm:$0xff] }
 0xabf   : > { %v2401_v10 = vpop.xlane.xlu1 %2400 }
 0xac0   : > { %v2409_v28 = vmul.f32 0.03125, %v2401_v10  ;;  %v2398_v36 = vpop.xlane.xlu0 %2397  ;;  %v2594_v10 = vld [vmem:[%s6269_s5 + $0x88] sm:$0xff] }
 0xac1   : > { %v2408_v38 = vmul.f32 0.03125, %v2398_v36  ;;  %v2595_v36 = vld [vmem:[%s6269_s5 + $0x90] sm:$0xff] }
 0xac2   : > { %v2413_v27 = vadd.f32 1e-05, %v2409_v28  ;;  %v5077_v28 = vpack.c.bf16 %v2594_v10, %v2593_v26 }
 0xac3   : > { %v2412_v31 = vadd.f32 1e-05, %v2408_v38  ;;  %v2407_v17 = vpop.xlane.xlu1 %2406  ;;  %v2596_v38 = vld [vmem:[%s6269_s5 + $0x98] sm:$0xff] }
 0xac4   : > { %5254 = vrsqrt.f32 %v2413_v27  ;;  %v2411_v39 = vmul.f32 0.03125, %v2407_v17  ;;  %v2404_v42 = vpop.xlane.xlu0 %2403  ;;  %5078 = vmatprep.subr.bf16.mxu1 %v5077_v28  ;;  %v5081_v27 = vpack.c.bf16 %v2596_v38, %v2595_v36  ;;  %v2590_v17 = vld [vmem:[%s6269_s5 + $0x68] sm:$0xff] }
 0xac5   : > { %5256 = vrsqrt.f32 %v2412_v31  ;;  %v2410_v58 = vmul.f32 0.03125, %v2404_v42  ;;  %5080 = vmatpush3.bf16.msra.mxu1 %v5077_v28  ;;  %v2589_v31 = vld [vmem:[%s6269_s5 + $0x60] sm:$0xff] }
 0xac6   : > { %v2415_v37 = vadd.f32 1e-05, %v2411_v39  ;;  %5082 = vmatprep.subr.bf16.mxu1 %v5081_v27  ;;  %v5085_v39 = vpack.c.bf16 %v2590_v17, %v2589_v31  ;;  %v3017_v42 = vld [vmem:[%s6268_s4 + $0xa0] sm:$0xff] }
 0xac7   : > { %v2414_v40 = vadd.f32 1e-05, %v2410_v58  ;;  %v3018_v58 = vld [vmem:[%s6268_s4 + $0xa8] sm:$0xff] }
 0xac8   : > { %5258 = vrsqrt.f32 %v2415_v37  ;;  %v5101_v37 = vpack.c.bf16 %v3018_v58, %v3017_v42 }
 0xac9   : > { %5260 = vrsqrt.f32 %v2414_v40  ;;  %5084 = vmatpush3.bf16.msra.mxu1 %v5081_v27 }
 0xaca   : > { %5086 = vmatprep.subr.bf16.mxu1 %v5085_v39 }
 0xace   : > { %v5255_v43 = vpop.eup %5254 }
 0xacf   : > { %v5257_v18 = vpop.eup %5256  ;;  %v2421_v48 = vmul.f32 %v5255_v43, %v2389_v25 }
 0xad0   : > { %v2420_v2 = vmul.f32 %v5257_v18, %v2388_v41 }
 0xad1   : > { %v2429_v30 = vmul.f32 %v4186_v46, %v2421_v48 }
 0xad2   : > { %v5259_v49 = vpop.eup %5258  ;;  %v2428_v52 = vmul.f32 %v4186_v46, %v2420_v2 }
 0xad3   : > { %v5261_v53 = vpop.eup %5260  ;;  %v2423_v19 = vmul.f32 %v5259_v49, %v2391_v13  ;;  %v2437_v54 = vadd.f32 %v4187_v6, %v2429_v30  ;;  %v5295_v13 = vld [vmem:[%s5484_s28 + $0x48] sm:$0xff]  ;;  %v2591_v49 = vld [vmem:[%s6269_s5 + $0x70] sm:$0xff] }
 0xad4   : > { %v2422_v21 = vmul.f32 %v5261_v53, %v2390_v20  ;;  %v2436_v55 = vadd.f32 %v4187_v6, %v2428_v52  ;;  %v5297_v20 = vld [vmem:[%s5484_s28 + $0x58] sm:$0xff] }
 0xad5   : > { %v5925_v56 = vadd.f32 %v2437_v54, %v5535_v45  ;;  %v2431_v59 = vmul.f32 %v4186_v46, %v2423_v19  ;;  %v2592_v52 = vld [vmem:[%s6269_s5 + $0x78] sm:$0xff] }
 0xad6   : > { %v5928_v61 = vadd.f32 %v2436_v55, %v5533_v44  ;;  %v2430_v32 = vmul.f32 %v4186_v46, %v2422_v21  ;;  %v5089_v54 = vpack.c.bf16 %v2592_v52, %v2591_v49  ;;  %v2855_v21 = vld [vmem:[%s6269_s5 + $0xa0] sm:$0xff]  ;;  %v2856_v55 = vld [vmem:[%s6269_s5 + $0xa8] sm:$0xff] }
 0xad7   : > { %v2439_v60 = vadd.f32 %v4187_v6, %v2431_v59 }
 0xad8   : > { %v5069_v62 = vpack.c.bf16 %v5925_v56, %v5928_v61  ;;  %v2438_v25 = vadd.f32 %v4187_v6, %v2430_v32 }
 0xad9   : > { %v5933_v41 = vadd.f32 %v2439_v60, %v5546_v51  ;;  %v5289_v51 = vld [vmem:[%s5484_s28 + $0x18] sm:$0xff]  ;;  %v5093_v60 = vpack.c.bf16 %v2856_v55, %v2855_v21 }
 0xada   : > { %5070 = vmatprep.subr.bf16.mxu0 %v5069_v62  ;;  %v5936_v45 = vadd.f32 %v2438_v25, %v5544_v50  ;;  %v5290_v50 = vld [vmem:[%s5484_s28 + $0x20] sm:$0xff] }
 0xadb   : > { %5072 = vmatpush3.bf16.msra.mxu0 %v5069_v62 }
 0xadc   : > { %v5073_v44 = vpack.c.bf16 %v5933_v41, %v5936_v45 }
 0xade   : > { %5074 = vmatprep.subr.bf16.mxu0 %v5073_v44 }
 0xadf   : > { %5076 = vmatpush3.bf16.msra.mxu0 %v5073_v44 }
 0xae0   : > { %5102 = vmatprep.subr.bf16.mxu0 %v5101_v37 }
 0xae2   : > { %4774 = vmatmul.mubr.msk.f32.vlgmr.msra.gmra.mrb[44].mxu0 %vm597_vm1, %v5287_v5 }
 0xae3   : > { %4776 = vmatprep.mubr.msk.f32.mxu0 %vm597_vm1, %v5288_v7  ;;  %5104 = vmatpush3.bf16.msra.mxu0 %v5101_v37  ;;  %v2857_v7 = vld [vmem:[%s6269_s5 + $0xb0] sm:$0xff] }
 0xae6   : > { %4777 = vmatmul.mubr.msk.f32.gmra.mrb[46].mxu0 %vm597_vm1, %v5289_v51  ;;  %v2858_v51 = vld [vmem:[%s6269_s5 + $0xb8] sm:$0xff] }
 0xae7   : > { %4779 = vmatprep.mubr.msk.f32.mxu0 %vm597_vm1, %v5290_v50  ;;  %v5097_v50 = vpack.c.bf16 %v2858_v51, %v2857_v7 }
 0xaea   : > { %4780 = vmatmul.mubr.msk.f32.gmra.mrb[48].mxu0 %vm597_vm1, %v5291_v8  ;;  %v3019_v8 = vld [vmem:[%s6268_s4 + $0xb0] sm:$0xff] }
 0xaeb   : > { %4782 = vmatprep.mubr.msk.f32.mxu0 %vm597_vm1, %v5292_v9  ;;  %v3020_v9 = vld [vmem:[%s6268_s4 + $0xb8] sm:$0xff] }
 0xaee   : > { %4783 = vmatmul.mubr.msk.f32.gmra.mrb[50].mxu0 %vm597_vm1, %v5293_v11  ;;  %v5105_v11 = vpack.c.bf16 %v3020_v9, %v3019_v8 }
 0xaef   : > { %4785 = vmatprep.mubr.msk.f32.mxu0 %vm597_vm1, %v5294_v12  ;;  %v4228_v12 = vld [vmem:[%s6273_s9 + $0xf] ss:$0 sm:$0xff] }
 0xaf0   : > { %5106 = vmatprep.subr.bf16.mxu0 %v5105_v11 }
 0xaf1   : > { %5108 = vmatpush3.bf16.msra.mxu0 %v5105_v11 }
 0xaf2   : > { %4786 = vmatmul.mubr.msk.f32.gmra.mrb[52].mxu0 %vm597_vm1, %v5295_v13 }
 0xaf3   : > { %4788 = vmatprep.mubr.msk.f32.mxu0 %vm597_vm1, %v5296_v14 }
 0xaf6   : > { %4789 = vmatmul.mubr.msk.f32.gmra.mrb[54].mxu0 %vm597_vm1, %v5297_v20 }
 0xaf7   : > { %4791 = vmatprep.mubr.msk.f32.mxu0 %vm597_vm1, %v5298_v22 }
 0xafa   : > { %4792 = vmatmul.mubr.msk.f32.gmra.mrb[56].mxu0 %vm597_vm1, %v5299_v23 }
 0xafb   : > { %4794 = vmatprep.mubr.msk.f32.mxu0 %vm597_vm1, %v5300_v24 }
 0xafe   : > { %4795 = vmatmul.mubr.msk.f32.gmra.mrb[58].mxu0 %vm597_vm1, %v5301_v29 }
 0xbb5   : > { %v4775_v40 = vpop.f32.mrb[44].mxu0 }
 0xbb6   : > { %v2510_v43 = vpop.f32.mrb[45].mxu0 }
 0xbb9   : > { %v4778_v46 = vpop.f32.mrb[46].mxu0 }
 0xbba   : > { %v2520_v18 = vpop.f32.mrb[47].mxu0 }
 0xbbd   : > { %v4781_v48 = vpop.f32.mrb[48].mxu0 }
 0xbbe   : > { %v2530_v2 = vpop.f32.mrb[49].mxu0 }
 0xbc1   : > { %v4784_v6 = vpop.f32.mrb[50].mxu0 }
 0xbc2   : > { %v2540_v30 = vpop.f32.mrb[51].mxu0 }
 0xbc5   : > { %v4787_v53 = vpop.f32.mrb[52].mxu0 }
 0xbc6   : > { %v2550_v19 = vpop.f32.mrb[53].mxu0 }
 0xbc7   : > { %4805 = vmatprep.mubr.msk.f32.mxu1 %vm597_vm1, %v2550_v19 }
 0xbc8   : > { %4806 = vmatmul.mubr.msk.f32.vlgmr.msra.gmra.mrb[24].mxu1 %vm597_vm1, %v4787_v53 }
 0xbc9   : > { %v4790_v59 = vpop.f32.mrb[54].mxu0  ;;  %5088 = vmatpush3.bf16.msra.mxu1 %v5085_v39 }
 0xbca   : > { %v2560_v32 = vpop.f32.mrb[55].mxu0  ;;  %5090 = vmatprep.subr.bf16.mxu1 %v5089_v54 }
 0xbcb   : > { %4808 = vmatprep.mubr.msk.f32.mxu1 %vm597_vm1, %v2560_v32 }
 0xbcc   : > { %4809 = vmatmul.mubr.msk.f32.gmra.mrb[26].mxu1 %vm597_vm1, %v4790_v59 }
 0xbcd   : > { %v4793_v62 = vpop.f32.mrb[56].mxu0  ;;  %5092 = vmatpush3.bf16.msra.mxu1 %v5089_v54 }
 0xbce   : > { %v2570_v25 = vpop.f32.mrb[57].mxu0  ;;  %5094 = vmatprep.subr.bf16.mxu1 %v5093_v60 }
 0xbcf   : > { %4811 = vmatprep.mubr.msk.f32.mxu1 %vm597_vm1, %v2570_v25 }
 0xbd0   : > { %4812 = vmatmul.mubr.msk.f32.gmra.mrb[28].mxu1 %vm597_vm1, %v4793_v62 }
 0xbd1   : > { %v4796_v44 = vpop.f32.mrb[58].mxu0 }
 0xbd2   : > { %v2580_v5 = vpop.f32.mrb[59].mxu0 }
 0xbd3   : > { %4814 = vmatprep.mubr.msk.f32.mxu1 %vm597_vm1, %v2580_v5 }
 0xbd4   : > { %4815 = vmatmul.mubr.msk.f32.gmra.mrb[30].mxu1 %vm597_vm1, %v4796_v44 }
 0xbd5   : > { %4825 = vmatprep.mubr.msk.f32.mxu1 %vm597_vm1, %v2510_v43 }
 0xbd8   : > { %4826 = vmatmul.mubr.msk.f32.vlgmr.msra.gmra.mrb[24].mxu1 %vm597_vm1, %v4775_v40 }
 0xbd9   : > { %4828 = vmatprep.mubr.msk.f32.mxu1 %vm597_vm1, %v2520_v18  ;;  %5096 = vmatpush3.bf16.msra.mxu1 %v5093_v60 }
 0xbda   : > { %5098 = vmatprep.subr.bf16.mxu1 %v5097_v50 }
 0xbdc   : > { %4829 = vmatmul.mubr.msk.f32.gmra.mrb[26].mxu1 %vm597_vm1, %v4778_v46 }
 0xbdd   : > { %4831 = vmatprep.mubr.msk.f32.mxu1 %vm597_vm1, %v2530_v2  ;;  %5100 = vmatpush3.bf16.msra.mxu1 %v5097_v50  ;;  %v4229_v2 = vld [vmem:[%s6273_s9 + $0x10] ss:$0 sm:$0xff] }
 0xbe0   : > { %4832 = vmatmul.mubr.msk.f32.gmra.mrb[28].mxu1 %vm597_vm1, %v4781_v48 }
 0xbe1   : > { %4834 = vmatprep.mubr.msk.f32.mxu1 %vm597_vm1, %v2540_v30 }
 0xbe4   : > { %4835 = vmatmul.mubr.msk.f32.gmra.mrb[30].mxu1 %vm597_vm1, %v4784_v6 }
 0xbe5   : > { %4845 = vmatprep.mubr.msk.f32.mxu1 %vm597_vm1, %v5815_v35 }
 0xbe8   : > { %4846 = vmatmul.mubr.msk.f32.vlgmr.msra.gmra.mrb[24].mxu1 %vm597_vm1, %v5812_v57 }
 0xbe9   : > { %4848 = vmatprep.mubr.msk.f32.mxu1 %vm597_vm1, %v5825_v3 }
 0xbec   : > { %4849 = vmatmul.mubr.msk.f32.gmra.mrb[26].mxu1 %vm597_vm1, %v5822_v33 }
 0xbed   : > { %4851 = vmatprep.mubr.msk.f32.mxu1 %vm597_vm1, %v5835_v15 }
 0xbf0   : > { %4852 = vmatmul.mubr.msk.f32.gmra.mrb[28].mxu1 %vm597_vm1, %v5832_v16 }
 0xbf1   : > { %4854 = vmatprep.mubr.msk.f32.mxu1 %vm597_vm1, %v5843_v34 }
 0xbf4   : > { %4855 = vmatmul.mubr.msk.f32.gmra.mrb[30].mxu1 %vm597_vm1, %v5840_v63 }
 0xcbb   : > { %v4847_v13 = vpop.f32.mrb[24].mxu1 }
 0xcbc   : > { %v3002_v14 = vadd.f32 %v4847_v13, %v4228_v12  ;;  %v2949_v20 = vpop.f32.mrb[25].mxu1 }
 0xcbd   : > { %v3001_v22 = vadd.f32 %v4228_v12, %v2949_v20 }
 0xcbe   : > { %v3010_v29 = vmax.f32 %v3002_v14, 0.0 }
 0xcbf   : > { %v3009_v23 = vmax.f32 %v3001_v22, 0.0  ;;  %v4850_v24 = vpop.f32.mrb[26].mxu1 }
 0xcc0   : > { %v3004_v26 = vadd.f32 %v4850_v24, %v4228_v12  ;;  %v2959_v10 = vpop.f32.mrb[27].mxu1 }
 0xcc1   : > { %v3003_v28 = vadd.f32 %v4228_v12, %v2959_v10  ;;  %4865 = vmatprep.mubr.msk.f32.mxu0 %vm597_vm1, %v3009_v23 }
 0xcc2   : > { %4866 = vmatmul.mubr.msk.f32.vlgmr.msra.gmra.mrb[60].mxu0 %vm597_vm1, %v3010_v29  ;;  %v3012_v27 = vmax.f32 %v3004_v26, 0.0 }
 0xcc3   : > { %v3011_v36 = vmax.f32 %v3003_v28, 0.0  ;;  %v4853_v38 = vpop.f32.mrb[28].mxu1 }
 0xcc4   : > { %v3006_v31 = vadd.f32 %v4853_v38, %v4228_v12  ;;  %v2969_v17 = vpop.f32.mrb[29].mxu1 }
 0xcc5   : > { %v3005_v39 = vadd.f32 %v4228_v12, %v2969_v17  ;;  %4868 = vmatprep.mubr.msk.f32.mxu0 %vm597_vm1, %v3011_v36 }
 0xcc6   : > { %4869 = vmatmul.mubr.msk.f32.gmra.mrb[62].mxu0 %vm597_vm1, %v3012_v27  ;;  %v3014_v37 = vmax.f32 %v3006_v31, 0.0 }
 0xcc7   : > { %v3013_v42 = vmax.f32 %v3005_v39, 0.0  ;;  %v4856_v58 = vpop.f32.mrb[30].mxu1 }
 0xcc8   : > { %v3008_v40 = vadd.f32 %v4856_v58, %v4228_v12  ;;  %v2979_v43 = vpop.f32.mrb[31].mxu1 }
 0xcc9   : > { %v3007_v46 = vadd.f32 %v4228_v12, %v2979_v43  ;;  %4871 = vmatprep.mubr.msk.f32.mxu0 %vm597_vm1, %v3013_v42 }
 0xcca   : > { %4872 = vmatmul.mubr.msk.f32.gmra.mrb[64].mxu0 %vm597_vm1, %v3014_v37  ;;  %v3016_v48 = vmax.f32 %v3008_v40, 0.0 }
 0xccb   : > { %v3015_v18 = vmax.f32 %v3007_v46, 0.0 }
 0xccd   : > { %4874 = vmatprep.mubr.msk.f32.mxu0 %vm597_vm1, %v3015_v18 }
 0xcce   : > { %4875 = vmatmul.mubr.msk.f32.gmra.mrb[66].mxu0 %vm597_vm1, %v3016_v48 }
 0xccf   : > { %4893 = vmatprep.mubr.msk.f32.mxu0 %vm1951_vm2, %v5785_v4 }
 0xd95   : > { %v4867_v6 = vpop.f32.mrb[60].mxu0 }
 0xd96   : > { %v3122_v30 = vadd.f32 %v4867_v6, %v4229_v2  ;;  %v3116_v49 = vpop.f32.mrb[61].mxu0 }
 0xd97   : > { %v3117_v52 = vadd.f32 %v4229_v2, %v3116_v49 }
 0xd98   : > { %v3160_v53 = vsel %vm597_vm1, %v3122_v30, 0.0 }
 0xd99   : > { %3161 = vadd.xlane.f32.xlu1 %v3160_v53  ;;  %v4870_v19 = vpop.f32.mrb[62].mxu0  ;;  %v3157_v54 = vsel %vm597_vm1, %v3117_v52, 0.0 }
 0xd9a   : > { %v3132_v21 = vadd.f32 %v4870_v19, %v4229_v2  ;;  %3158 = vadd.xlane.f32.xlu0 %v3157_v54  ;;  %v3126_v55 = vpop.f32.mrb[63].mxu0 }
 0xd9b   : > { %v3127_v59 = vadd.f32 %v4229_v2, %v3126_v55 }
 0xd9c   : > { %v3166_v4 = vsel %vm597_vm1, %v3132_v21, 0.0 }
 0xd9d   : > { %3167 = vadd.xlane.f32.xlu1 %v3166_v4  ;;  %v4873_v32 = vpop.f32.mrb[64].mxu0  ;;  %v3163_v60 = vsel %vm597_vm1, %v3127_v59, 0.0 }
 0xd9e   : > { %v3142_v62 = vadd.f32 %v4873_v32, %v4229_v2  ;;  %3164 = vadd.xlane.f32.xlu0 %v3163_v60  ;;  %v3136_v25 = vpop.f32.mrb[65].mxu0 }
 0xd9f   : > { %v3137_v44 = vadd.f32 %v4229_v2, %v3136_v25 }
 0xda0   : > { %v3172_v5 = vsel %vm597_vm1, %v3142_v62, 0.0 }
 0xda1   : > { %3173 = vadd.xlane.f32.xlu1 %v3172_v5  ;;  %v4876_v7 = vpop.f32.mrb[66].mxu0  ;;  %v3169_v51 = vsel %vm597_vm1, %v3137_v44, 0.0  ;;  %v3383_v5 = vld [vmem:[%s6270_s6 + $0x68] sm:$0xff] }
 0xda2   : > { %v3152_v50 = vadd.f32 %v4876_v7, %v4229_v2  ;;  %3170 = vadd.xlane.f32.xlu0 %v3169_v51  ;;  %v3146_v8 = vpop.f32.mrb[67].mxu0  ;;  %v3384_v7 = vld [vmem:[%s6270_s6 + $0x70] sm:$0xff] }
 0xda3   : > { %v3147_v9 = vadd.f32 %v4229_v2, %v3146_v8 }
 0xda4   : > { %v3178_v11 = vsel %vm597_vm1, %v3152_v50, 0.0 }
 0xda5   : > { %3179 = vadd.xlane.f32.xlu1 %v3178_v11  ;;  %v3175_v12 = vsel %vm597_vm1, %v3147_v9, 0.0 }
 0xda6   : > { %3176 = vadd.xlane.f32.xlu0 %v3175_v12 }
 0xe26   : > { %v3162_v13 = vpop.xlane.xlu1 %3161 }
 0xe27   : > { %v3182_v14 = vmul.f32 0.03125, %v3162_v13  ;;  %v3159_v20 = vpop.xlane.xlu0 %3158 }
 0xe28   : > { %v3181_v22 = vmul.f32 0.03125, %v3159_v20 }
 0xe29   : > { %v6074_v23 = vsub.f32 %v3122_v30, %v3182_v14 }
 0xe2a   : > { %v6076_v24 = vsub.f32 %v3117_v52, %v3181_v22  ;;  %v3168_v29 = vpop.xlane.xlu1 %3167 }
 0xe2b   : > { %v3184_v26 = vmul.f32 0.03125, %v3168_v29  ;;  %v3165_v10 = vpop.xlane.xlu0 %3164  ;;  %v3198_v28 = vmul.f32 %v6074_v23, %v6074_v23 }
 0xe2c   : > { %v3183_v36 = vmul.f32 0.03125, %v3165_v10  ;;  %v3197_v38 = vmul.f32 %v6076_v24, %v6076_v24 }
 0xe2d   : > { %v6082_v27 = vsub.f32 %v3132_v21, %v3184_v26  ;;  %v3208_v31 = vsel %vm597_vm1, %v3198_v28, 0.0 }
 0xe2e   : > { %v6085_v17 = vsub.f32 %v3127_v59, %v3183_v36  ;;  %v3174_v39 = vpop.xlane.xlu1 %3173  ;;  %3209 = vadd.xlane.f32.xlu1 %v3208_v31  ;;  %v3205_v42 = vsel %vm597_vm1, %v3197_v38, 0.0 }
 0xe2f   : > { %v3186_v58 = vmul.f32 0.03125, %v3174_v39  ;;  %v3171_v37 = vpop.xlane.xlu0 %3170  ;;  %3206 = vadd.xlane.f32.xlu0 %v3205_v42  ;;  %v3200_v40 = vmul.f32 %v6082_v27, %v6082_v27 }
 0xe30   : > { %v3185_v43 = vmul.f32 0.03125, %v3171_v37  ;;  %v3199_v46 = vmul.f32 %v6085_v17, %v6085_v17 }
 0xe31   : > { %v6092_v18 = vsub.f32 %v3142_v62, %v3186_v58  ;;  %v3214_v48 = vsel %vm597_vm1, %v3200_v40, 0.0 }
 0xe32   : > { %v6095_v2 = vsub.f32 %v3137_v44, %v3185_v43  ;;  %3215 = vadd.xlane.f32.xlu1 %v3214_v48  ;;  %v3180_v6 = vpop.xlane.xlu1 %3179  ;;  %v3211_v30 = vsel %vm597_vm1, %v3199_v46, 0.0  ;;  %v3382_v44 = vld [vmem:[%s6270_s6 + $0x60] sm:$0xff] }
 0xe33   : > { %v3188_v49 = vmul.f32 0.03125, %v3180_v6  ;;  %3212 = vadd.xlane.f32.xlu0 %v3211_v30  ;;  %v3177_v52 = vpop.xlane.xlu0 %3176  ;;  %v3202_v53 = vmul.f32 %v6092_v18, %v6092_v18  ;;  %v5125_v51 = vpack.c.bf16 %v3383_v5, %v3382_v44 }
 0xe34   : > { %v3187_v19 = vmul.f32 0.03125, %v3177_v52  ;;  %v3201_v54 = vmul.f32 %v6095_v2, %v6095_v2 }
 0xe35   : > { %v6102_v21 = vsub.f32 %v3152_v50, %v3188_v49  ;;  %v3220_v55 = vsel %vm597_vm1, %v3202_v53, 0.0  ;;  %v3385_v50 = vld [vmem:[%s6270_s6 + $0x78] sm:$0xff]  ;;  %5126 = vmatprep.subr.bf16.mxu1 %v5125_v51  ;;  %v4238_v49 = vld [vmem:[%s6273_s9 + $0x11] ss:$0 sm:$0xff] }
 0xe36   : > { %v6105_v59 = vsub.f32 %v3147_v9, %v3187_v19  ;;  %3221 = vadd.xlane.f32.xlu1 %v3220_v55  ;;  %v3217_v4 = vsel %vm597_vm1, %v3201_v54, 0.0  ;;  %v5129_v8 = vpack.c.bf16 %v3385_v50, %v3384_v7  ;;  %5128 = vmatpush3.bf16.msra.mxu1 %v5125_v51  ;;  %v4239_v54 = vld [vmem:[%s6273_s9 + $0x12] ss:$0 sm:$0xff] }
 0xe37   : > { %3218 = vadd.xlane.f32.xlu0 %v3217_v4  ;;  %v3204_v32 = vmul.f32 %v6102_v21, %v6102_v21 }
 0xe38   : > { %v3203_v60 = vmul.f32 %v6105_v59, %v6105_v59  ;;  %5130 = vmatprep.subr.bf16.mxu1 %v5129_v8 }
 0xe39   : > { %v3226_v62 = vsel %vm597_vm1, %v3204_v32, 0.0 }
 0xe3a   : > { %3227 = vadd.xlane.f32.xlu1 %v3226_v62  ;;  %v3223_v25 = vsel %vm597_vm1, %v3203_v60, 0.0  ;;  %5132 = vmatpush3.bf16.msra.mxu1 %v5129_v8 }
 0xe3b   : > { %3224 = vadd.xlane.f32.xlu0 %v3223_v25 }
 0xebb   : > { %v3210_v9 = vpop.xlane.xlu1 %3209 }
 0xebc   : > { %v3230_v11 = vmul.f32 0.03125, %v3210_v9  ;;  %v3207_v12 = vpop.xlane.xlu0 %3206 }
 0xebd   : > { %v3229_v13 = vmul.f32 0.03125, %v3207_v12 }
 0xebe   : > { %v3238_v14 = vadd.f32 1e-05, %v3230_v11 }
 0xebf   : > { %v3237_v20 = vadd.f32 1e-05, %v3229_v13  ;;  %v3216_v22 = vpop.xlane.xlu1 %3215 }
 0xec0   : > { %5262 = vrsqrt.f32 %v3238_v14  ;;  %v3232_v29 = vmul.f32 0.03125, %v3216_v22  ;;  %v3213_v26 = vpop.xlane.xlu0 %3212 }
 0xec1   : > { %5264 = vrsqrt.f32 %v3237_v20  ;;  %v3231_v10 = vmul.f32 0.03125, %v3213_v26 }
 0xec2   : > { %v3240_v28 = vadd.f32 1e-05, %v3232_v29 }
 0xec3   : > { %v3239_v36 = vadd.f32 1e-05, %v3231_v10  ;;  %v3222_v38 = vpop.xlane.xlu1 %3221 }
 0xec4   : > { %5266 = vrsqrt.f32 %v3240_v28  ;;  %v3234_v31 = vmul.f32 0.03125, %v3222_v38  ;;  %v3219_v39 = vpop.xlane.xlu0 %3218 }
 0xec5   : > { %5268 = vrsqrt.f32 %v3239_v36  ;;  %v3233_v42 = vmul.f32 0.03125, %v3219_v39 }
 0xec6   : > { %v3242_v58 = vadd.f32 1e-05, %v3234_v31 }
 0xec7   : > { %v3241_v37 = vadd.f32 1e-05, %v3233_v42  ;;  %v3228_v40 = vpop.xlane.xlu1 %3227 }
 0xec8   : > { %5270 = vrsqrt.f32 %v3242_v58  ;;  %v3236_v43 = vmul.f32 0.03125, %v3228_v40  ;;  %v3225_v46 = vpop.xlane.xlu0 %3224 }
 0xec9   : > { %5272 = vrsqrt.f32 %v3241_v37  ;;  %v3235_v48 = vmul.f32 0.03125, %v3225_v46 }
 0xeca   : > { %v5263_v6 = vpop.eup %5262  ;;  %v3244_v30 = vadd.f32 1e-05, %v3236_v43 }
 0xecb   : > { %v5265_v52 = vpop.eup %5264  ;;  %v3243_v53 = vadd.f32 1e-05, %v3235_v48  ;;  %v3254_v19 = vmul.f32 %v5263_v6, %v6074_v23 }
 0xecc   : > { %5274 = vrsqrt.f32 %v3244_v30  ;;  %v3253_v55 = vmul.f32 %v5265_v52, %v6076_v24  ;;  %v3595_v30 = vld [vmem:[%s6268_s4 + $0xd0] sm:$0xff] }
 0xecd   : > { %5276 = vrsqrt.f32 %v3243_v53  ;;  %v3266_v4 = vmul.f32 %v4238_v49, %v3254_v19  ;;  %v4252_v53 = vld [vmem:[%s6273_s9 + $0x13] ss:$0 sm:$0xff] }
 0xece   : > { %v5267_v32 = vpop.eup %5266  ;;  %v3265_v60 = vmul.f32 %v4238_v49, %v3253_v55 }
 0xecf   : > { %v5269_v62 = vpop.eup %5268  ;;  %v3278_v25 = vadd.f32 %v4239_v54, %v3266_v4  ;;  %v3256_v44 = vmul.f32 %v5267_v32, %v6082_v27 }
 0xed0   : > { %v3277_v5 = vadd.f32 %v4239_v54, %v3265_v60  ;;  %v3255_v7 = vmul.f32 %v5269_v62, %v6085_v17 }
 0xed1   : > { %v3286_v23 = vadd.f32 %v3278_v25, %v5812_v57  ;;  %v3268_v51 = vmul.f32 %v4238_v49, %v3256_v44 }
 0xed2   : > { %v5271_v50 = vpop.eup %5270  ;;  %v3285_v8 = vadd.f32 %v3277_v5, %v5815_v35  ;;  %v3267_v9 = vmul.f32 %v4238_v49, %v3255_v7 }
 0xed3   : > { %v5273_v11 = vpop.eup %5272  ;;  %v3280_v24 = vadd.f32 %v4239_v54, %v3268_v51  ;;  %v3258_v12 = vmul.f32 %v5271_v50, %v6092_v18  ;;  %v4253_v51 = vld [vmem:[%s6273_s9 + $0x14] ss:$0 sm:$0xff] }
 0xed4   : > { %v5109_v13 = vpack.c.bf16 %v3286_v23, %v3285_v8  ;;  %v3279_v14 = vadd.f32 %v4239_v54, %v3267_v9  ;;  %v3257_v20 = vmul.f32 %v5273_v11, %v6095_v2 }
 0xed5   : > { %v3288_v27 = vadd.f32 %v3280_v24, %v5822_v33  ;;  %v3270_v22 = vmul.f32 %v4238_v49, %v3258_v12 }
 0xed6   : > { %v5275_v29 = vpop.eup %5274  ;;  %5110 = vmatprep.subr.bf16.mxu0 %v5109_v13  ;;  %v3287_v57 = vadd.f32 %v3279_v14, %v5825_v3  ;;  %v3269_v17 = vmul.f32 %v4238_v49, %v3257_v20 }
 0xed7   : > { %v5277_v26 = vpop.eup %5276  ;;  %5112 = vmatpush3.bf16.msra.mxu0 %v5109_v13  ;;  %v3282_v35 = vadd.f32 %v4239_v54, %v3270_v22  ;;  %v3260_v10 = vmul.f32 %v5275_v29, %v6102_v21 }
 0xed8   : > { %v5113_v28 = vpack.c.bf16 %v3288_v27, %v3287_v57  ;;  %v3281_v36 = vadd.f32 %v4239_v54, %v3269_v17  ;;  %v3259_v18 = vmul.f32 %v5277_v26, %v6105_v59  ;;  %v3381_v59 = vld [vmem:[%s6270_s6 + $0x58] sm:$0xff] }
 0xed9   : > { %v3290_v38 = vadd.f32 %v3282_v35, %v5832_v16  ;;  %v3272_v2 = vmul.f32 %v4238_v49, %v3260_v10  ;;  %v3378_v16 = vld [vmem:[%s6270_s6 + $0x40] sm:$0xff] }
 0xeda   : > { %5114 = vmatprep.subr.bf16.mxu0 %v5113_v28  ;;  %v3289_v33 = vadd.f32 %v3281_v36, %v5835_v15  ;;  %v3271_v31 = vmul.f32 %v4238_v49, %v3259_v18  ;;  %v3379_v15 = vld [vmem:[%s6270_s6 + $0x48] sm:$0xff]  ;;  %v3596_v49 = vld [vmem:[%s6268_s4 + $0xd8] sm:$0xff] }
 0xedb   : > { %5116 = vmatpush3.bf16.msra.mxu0 %v5113_v28  ;;  %v3284_v39 = vadd.f32 %v4239_v54, %v3272_v2  ;;  %v5145_v52 = vpack.c.bf16 %v3596_v49, %v3595_v30 }
 0xedc   : > { %v5117_v3 = vpack.c.bf16 %v3290_v38, %v3289_v33  ;;  %v3283_v42 = vadd.f32 %v4239_v54, %v3271_v31 }
 0xedd   : > { %v3292_v58 = vadd.f32 %v3284_v39, %v5840_v63  ;;  %v5133_v63 = vpack.c.bf16 %v3379_v15, %v3378_v16 }
 0xede   : > { %5118 = vmatprep.subr.bf16.mxu0 %v5117_v3  ;;  %v3291_v21 = vadd.f32 %v3283_v42, %v5843_v34  ;;  %v3593_v34 = vld [vmem:[%s6268_s4 + $0xc0] sm:$0xff] }
 0xedf   : > { %5120 = vmatpush3.bf16.msra.mxu0 %v5117_v3  ;;  %5134 = vmatprep.subr.bf16.mxu1 %v5133_v63 }
 0xee0   : > { %v5121_v37 = vpack.c.bf16 %v3292_v58, %v3291_v21 }
 0xee2   : > { %5122 = vmatprep.subr.bf16.mxu0 %v5121_v37 }
 0xee3   : > { %5124 = vmatpush3.bf16.msra.mxu0 %v5121_v37 }
 0xee6   : > { %4894 = vmatmul.mubr.msk.f32.vlgmr.msra.gmra.mrb[68].mxu0 %vm1951_vm2, %v5848_v0  ;;  %v3594_v0 = vld [vmem:[%s6268_s4 + $0xc8] sm:$0xff] }
 0xee7   : > { %4896 = vmatprep.mubr.msk.f32.mxu0 %vm1951_vm2, %v5851_v1  ;;  %v5141_v1 = vpack.c.bf16 %v3594_v0, %v3593_v34  ;;  %v3774_v34 = vld [vmem:[%s6268_s4 + $0x48] sm:$0xff] }
 0xee9   : > { %5142 = vmatprep.subr.bf16.mxu0 %v5141_v1 }
 0xeea   : > { %4897 = vmatmul.mubr.msk.f32.gmra.mrb[70].mxu0 %vm1951_vm2, %v5858_v47  ;;  %v3380_v47 = vld [vmem:[%s6270_s6 + $0x50] sm:$0xff] }
 0xeeb   : > { %5144 = vmatpush3.bf16.msra.mxu0 %v5141_v1  ;;  %v5137_v46 = vpack.c.bf16 %v3381_v59, %v3380_v47  ;;  %v3775_v1 = vld [vmem:[%s6268_s4 + $0x50] sm:$0xff]  ;;  %v3776_v47 = vld [vmem:[%s6268_s4 + $0x58] sm:$0xff] }
 0xeec   : > { %5146 = vmatprep.subr.bf16.mxu0 %v5145_v52  ;;  %v5153_v59 = vpack.c.bf16 %v3776_v47, %v3775_v1 }
 0xeef   : > { %5148 = vmatpush3.bf16.msra.mxu0 %v5145_v52 }
 0xfb9   : > { %v4895_v40 = vpop.f32.mrb[68].mxu0 }
 0xfba   : > { %v3359_v43 = vpop.f32.mrb[69].mxu0 }
 0xfbb   : > { %4907 = vmatprep.mubr.msk.f32.mxu1 %vm597_vm1, %v3359_v43  ;;  %v3884_v43 = vld [vmem:[%s6271_s7 + $0x8] sm:$0xff] }
 0xfbc   : > { %4908 = vmatmul.mubr.msk.f32.vlgmr.msra.gmra.mrb[32].mxu1 %vm597_vm1, %v4895_v40  ;;  %v3883_v40 = vld [vmem:[%s6271_s7] sm:$0xff] }
 0xfbd   : > { %v4898_v48 = vpop.f32.mrb[70].mxu0  ;;  %5136 = vmatpush3.bf16.msra.mxu1 %v5133_v63  ;;  %v3773_v63 = vld [vmem:[%s6268_s4 + $0x40] sm:$0xff] }
 0xfbe   : > { %v3369_v6 = vpop.f32.mrb[71].mxu0  ;;  %5138 = vmatprep.subr.bf16.mxu1 %v5137_v46  ;;  %v5149_v0 = vpack.c.bf16 %v3774_v34, %v3773_v63 }
 0xfbf   : > { %4910 = vmatprep.mubr.msk.f32.mxu1 %vm597_vm1, %v3369_v6 }
 0xfc0   : > { %4911 = vmatmul.mubr.msk.f32.gmra.mrb[34].mxu1 %vm597_vm1, %v4898_v48  ;;  %5150 = vmatprep.subr.bf16.mxu0 %v5149_v0 }
 0xfc1   : > { %5140 = vmatpush3.bf16.msra.mxu1 %v5137_v46  ;;  %4921 = vmatprep.mubr.msk.f32.mxu1 %vm597_vm1, %v5928_v61  ;;  %v5157_v46 = vpack.c.bf16 %v3884_v43, %v3883_v40 }
 0xfc3   : > { %5158 = vmatprep.subr.bf16.mxu1 %v5157_v46 }
 0xfc4   : > { %4922 = vmatmul.mubr.msk.f32.vlgmr.msra.gmra.mrb[32].mxu1 %vm597_vm1, %v5925_v56 }
 0xfc5   : > { %4924 = vmatprep.mubr.msk.f32.mxu1 %vm597_vm1, %v5936_v45  ;;  %5160 = vmatpush3.bf16.msra.mxu1 %v5157_v46 }
 0xfc8   : > { %4925 = vmatmul.mubr.msk.f32.gmra.mrb[34].mxu1 %vm597_vm1, %v5933_v41 }
0x1097   : > { %v4923_v19 = vpop.f32.mrb[32].mxu1 }
0x1098   : > { %v3586_v54 = vadd.f32 %v4923_v19, %v4252_v53  ;;  %v3561_v55 = vpop.f32.mrb[33].mxu1 }
0x1099   : > { %v3585_v4 = vadd.f32 %v4252_v53, %v3561_v55 }
0x109a   : > { %v3590_v62 = vmax.f32 %v3586_v54, 0.0 }
0x109b   : > { %v3589_v32 = vmax.f32 %v3585_v4, 0.0  ;;  %v4926_v60 = vpop.f32.mrb[34].mxu1 }
0x109c   : > { %v3588_v25 = vadd.f32 %v4926_v60, %v4252_v53  ;;  %v3571_v44 = vpop.f32.mrb[35].mxu1 }
0x109d   : > { %v3587_v5 = vadd.f32 %v4252_v53, %v3571_v44  ;;  %4935 = vmatprep.mubr.msk.f32.mxu0 %vm597_vm1, %v3589_v32 }
0x109e   : > { %4936 = vmatmul.mubr.msk.f32.vlgmr.msra.gmra.mrb[72].mxu0 %vm597_vm1, %v3590_v62  ;;  %v3592_v23 = vmax.f32 %v3588_v25, 0.0  ;;  %v4258_v25 = vld [vmem:[%s6273_s9 + $0x15] ss:$0 sm:$0xff] }
0x109f   : > { %v3591_v7 = vmax.f32 %v3587_v5, 0.0  ;;  %5152 = vmatpush3.bf16.msra.mxu0 %v5149_v0 }
0x10a0   : > { %5154 = vmatprep.subr.bf16.mxu0 %v5153_v59 }
0x10a1   : > { %4938 = vmatprep.mubr.msk.f32.mxu0 %vm597_vm1, %v3591_v7 }
0x10a2   : > { %4939 = vmatmul.mubr.msk.f32.gmra.mrb[74].mxu0 %vm597_vm1, %v3592_v23  ;;  %v4259_v23 = vld [vmem:[%s6273_s9 + $0x16] ss:$0 sm:$0xff] }
0x10a3   : > { %5156 = vmatpush3.bf16.msra.mxu0 %v5153_v59 }
0x1171   : > { %v4937_v50 = vpop.f32.mrb[72].mxu0 }
0x1172   : > { %v3686_v8 = vadd.f32 %v4937_v50, %v4253_v51  ;;  %v3680_v9 = vpop.f32.mrb[73].mxu0 }
0x1173   : > { %v3681_v11 = vadd.f32 %v4253_v51, %v3680_v9 }
0x1174   : > { %v3704_v24 = vsel %vm597_vm1, %v3686_v8, 0.0 }
0x1175   : > { %3705 = vadd.xlane.f32.xlu1 %v3704_v24  ;;  %v4940_v12 = vpop.f32.mrb[74].mxu0  ;;  %v3701_v13 = vsel %vm597_vm1, %v3681_v11, 0.0 }
0x1176   : > { %v3696_v14 = vadd.f32 %v4940_v12, %v4253_v51  ;;  %3702 = vadd.xlane.f32.xlu0 %v3701_v13  ;;  %v3690_v20 = vpop.f32.mrb[75].mxu0 }
0x1177   : > { %v3691_v27 = vadd.f32 %v4253_v51, %v3690_v20 }
0x1178   : > { %v3710_v22 = vsel %vm597_vm1, %v3696_v14, 0.0 }
0x1179   : > { %3711 = vadd.xlane.f32.xlu1 %v3710_v22  ;;  %v3707_v29 = vsel %vm597_vm1, %v3691_v27, 0.0 }
0x117a   : > { %3708 = vadd.xlane.f32.xlu0 %v3707_v29 }
0x1202   : > { %v3706_v57 = vpop.xlane.xlu1 %3705 }
0x1203   : > { %v3714_v17 = vmul.f32 0.03125, %v3706_v57  ;;  %v3703_v26 = vpop.xlane.xlu0 %3702 }
0x1204   : > { %v3713_v35 = vmul.f32 0.03125, %v3703_v26 }
0x1205   : > { %v3718_v10 = vsub.f32 %v3686_v8, %v3714_v17 }
0x1206   : > { %v3717_v28 = vsub.f32 %v3681_v11, %v3713_v35  ;;  %v3712_v36 = vpop.xlane.xlu1 %3711 }
0x1207   : > { %v3716_v18 = vmul.f32 0.03125, %v3712_v36  ;;  %v3709_v38 = vpop.xlane.xlu0 %3708  ;;  %v3722_v2 = vmul.f32 %v3718_v10, %v3718_v10 }
0x1208   : > { %v3715_v33 = vmul.f32 0.03125, %v3709_v38  ;;  %v3721_v31 = vmul.f32 %v3717_v28, %v3717_v28 }
0x1209   : > { %v3720_v39 = vsub.f32 %v3696_v14, %v3716_v18  ;;  %v3728_v3 = vsel %vm597_vm1, %v3722_v2, 0.0 }
0x120a   : > { %v3719_v42 = vsub.f32 %v3691_v27, %v3715_v33  ;;  %3729 = vadd.xlane.f32.xlu1 %v3728_v3  ;;  %v3725_v58 = vsel %vm597_vm1, %v3721_v31, 0.0 }
0x120b   : > { %3726 = vadd.xlane.f32.xlu0 %v3725_v58  ;;  %v3724_v21 = vmul.f32 %v3720_v39, %v3720_v39  ;;  %v4265_v58 = vld [vmem:[%s6272_s8] ss:$0 sm:$0xff] }
0x120c   : > { %v3723_v37 = vmul.f32 %v3719_v42, %v3719_v42 }
0x120d   : > { %v3734_v16 = vsel %vm597_vm1, %v3724_v21, 0.0 }
0x120e   : > { %3735 = vadd.xlane.f32.xlu1 %v3734_v16  ;;  %v3731_v15 = vsel %vm597_vm1, %v3723_v37, 0.0 }
0x120f   : > { %3732 = vadd.xlane.f32.xlu0 %v3731_v15 }
0x1297   : > { %v3730_v48 = vpop.xlane.xlu1 %3729 }
0x1298   : > { %v3738_v6 = vmul.f32 0.03125, %v3730_v48  ;;  %v3727_v30 = vpop.xlane.xlu0 %3726 }
0x1299   : > { %v3737_v49 = vmul.f32 0.03125, %v3727_v30 }
0x129a   : > { %v3742_v52 = vadd.f32 1e-05, %v3738_v6 }
0x129b   : > { %v3741_v53 = vadd.f32 1e-05, %v3737_v49  ;;  %v3736_v19 = vpop.xlane.xlu1 %3735 }
0x129c   : > { %5278 = vrsqrt.f32 %v3742_v52  ;;  %v3740_v54 = vmul.f32 0.03125, %v3736_v19  ;;  %v3733_v55 = vpop.xlane.xlu0 %3732 }
0x129d   : > { %5280 = vrsqrt.f32 %v3741_v53  ;;  %v3739_v4 = vmul.f32 0.03125, %v3733_v55 }
0x129e   : > { %v3744_v32 = vadd.f32 1e-05, %v3740_v54 }
0x129f   : > { %v3743_v60 = vadd.f32 1e-05, %v3739_v4 }
0x12a0   : > { %5282 = vrsqrt.f32 %v3744_v32 }
0x12a1   : > { %5284 = vrsqrt.f32 %v3743_v60 }
0x12a6   : > { %v5279_v62 = vpop.eup %5278 }
0x12a7   : > { %v5281_v44 = vpop.eup %5280  ;;  %v3750_v5 = vmul.f32 %v5279_v62, %v3718_v10 }
0x12a8   : > { %v3749_v7 = vmul.f32 %v5281_v44, %v3717_v28 }
0x12a9   : > { %v3758_v51 = vmul.f32 %v4258_v25, %v3750_v5 }
0x12aa   : > { %v5283_v50 = vpop.eup %5282  ;;  %v3757_v8 = vmul.f32 %v4258_v25, %v3749_v7 }
0x12ab   : > { %v5285_v9 = vpop.eup %5284  ;;  %v3752_v11 = vmul.f32 %v5283_v50, %v3720_v39  ;;  %v3766_v24 = vadd.f32 %v4259_v23, %v3758_v51 }
0x12ac   : > { %v3751_v12 = vmul.f32 %v5285_v9, %v3719_v42  ;;  %v3765_v13 = vadd.f32 %v4259_v23, %v3757_v8 }
0x12ad   : > { %v3760_v14 = vmul.f32 %v4258_v25, %v3752_v11  ;;  %v3770_v22 = vadd.f32 %v3766_v24, %v5925_v56  ;;  %v3886_v56 = vld [vmem:[%s6271_s7 + $0x18] sm:$0xff] }
0x12ae   : > { %v3769_v20 = vadd.f32 %v3765_v13, %v5928_v61  ;;  %v3759_v27 = vmul.f32 %v4258_v25, %v3751_v12  ;;  %v3885_v61 = vld [vmem:[%s6271_s7 + $0x10] sm:$0xff] }
0x12af   : > { %v3768_v29 = vadd.f32 %v4259_v23, %v3760_v14  ;;  %v5161_v35 = vpack.c.bf16 %v3886_v56, %v3885_v61 }
0x12b0   : > { %4949 = vmatprep.mubr.msk.f32.mxu0 %vm597_vm1, %v3769_v20  ;;  %v3767_v57 = vadd.f32 %v4259_v23, %v3759_v27 }
0x12b1   : > { %4950 = vmatmul.mubr.msk.f32.vlgmr.msra.gmra.mrb[76].mxu0 %vm597_vm1, %v3770_v22  ;;  %v3772_v26 = vadd.f32 %v3768_v29, %v5933_v41  ;;  %5162 = vmatprep.subr.bf16.mxu1 %v5161_v35 }
0x12b2   : > { %v3771_v17 = vadd.f32 %v3767_v57, %v5936_v45  ;;  %5164 = vmatpush3.bf16.msra.mxu1 %v5161_v35  ;;  %v4260_v45 = vld [vmem:[%s6273_s9 + $0x6] ss:$0 sm:$0xff] }
0x12b4   : > { %4952 = vmatprep.mubr.msk.f32.mxu0 %vm597_vm1, %v3771_v17 }
0x12b5   : > { %4953 = vmatmul.mubr.msk.f32.gmra.mrb[78].mxu0 %vm597_vm1, %v3772_v26 }
0x1384   : > { %v4951_v41 = vpop.f32.mrb[76].mxu0 }
0x1385   : > { %v3866_v10 = vadd.f32 %v4951_v41, %v4260_v45  ;;  %v3860_v28 = vpop.f32.mrb[77].mxu0 }
0x1386   : > { %v3861_v36 = vadd.f32 %v4260_v45, %v3860_v28 }
0x1387   : > { %v3880_v2 = vmax.f32 %v3866_v10, 0.0 }
0x1388   : > { %v3879_v18 = vmax.f32 %v3861_v36, 0.0  ;;  %v4954_v38 = vpop.f32.mrb[78].mxu0 }
0x1389   : > { %v3876_v33 = vadd.f32 %v4954_v38, %v4260_v45  ;;  %v3870_v31 = vpop.f32.mrb[79].mxu0 }
0x138a   : > { %v3871_v39 = vadd.f32 %v4260_v45, %v3870_v31  ;;  %4963 = vmatprep.mubr.msk.f32.mxu1 %vm597_vm1, %v3879_v18 }
0x138b   : > { %4964 = vmatmul.mubr.msk.f32.vlgmr.msra.gmra.mrb[36].mxu1 %vm597_vm1, %v3880_v2  ;;  %v3882_v42 = vmax.f32 %v3876_v33, 0.0 }
0x138c   : > { %v3881_v3 = vmax.f32 %v3871_v39, 0.0 }
0x138e   : > { %4966 = vmatprep.mubr.msk.f32.mxu1 %vm597_vm1, %v3881_v3 }
0x138f   : > { %4967 = vmatmul.mubr.msk.f32.gmra.mrb[38].mxu1 %vm597_vm1, %v3882_v42 }
0x145e   : > { %v4965_v21 = vpop.f32.mrb[36].mxu1 }
0x145f   : > { %v3978_v37 = vadd.f32 %v4965_v21, %v4265_v58  ;;  %v3972_v16 = vpop.f32.mrb[37].mxu1 }
0x1460   : > { %v3973_v15 = vadd.f32 %v4265_v58, %v3972_v16 }
0x1461   : > { %3992 = vst [vmem:[%s399_s20 + $0x8] sm:$0xff] %v3978_v37 }
0x1462   : > { %3991 = vst [vmem:[%s399_s20] sm:$0xff] %v3973_v15  ;;  %v4968_v63 = vpop.f32.mrb[38].mxu1 }
0x1463   : > { %v3988_v34 = vadd.f32 %v4968_v63, %v4265_v58  ;;  %v3982_v0 = vpop.f32.mrb[39].mxu1 }
0x1464   : > { %v3983_v1 = vadd.f32 %v4265_v58, %v3982_v0 }
0x1465   : > { %3994 = vst [vmem:[%s399_s20 + $0x18] sm:$0xff] %v3988_v34 }
0x1466   : > { %3993 = vst [vmem:[%s399_s20 + $0x10] sm:$0xff] %v3983_v1 }
0x1467 PF: > { %s20_s13 = sadd.s32 1, %s5308_s13  }
0x1468   : > { %p17_p4 = scmp.ge.s32.totalorder %s20_s13, 6  }
0x146a   :  { %19 = sbr.rel (!%p17_p4) target bundleno = 1 (0x1), region = 96 }

</bundles_post_ra>
